<compile_context>
chip_gen: v7x
topology: tpu7x:2x2x1
jax: 0.10.0
libtpu: 0.0.40
codegen_flags: <defaults>
</compile_context>

<pallas_src>
import functools
import math
from typing import NamedTuple

import jax
import jax.numpy as jnp
from jax.experimental import pallas as pl
from jax.experimental.pallas import tpu as pltpu


def _round_up(x, m):
    return (x + m - 1) // m * m


class _Geom(NamedTuple):
    C: int; H: int; W: int
    k1: int; s1: int; a1: int
    HB: int; WB: int
    OH1: int; OW1: int; P1: int; P1pad: int; Kc1: int; C1: int
    k2: int; s2: int; OH2: int; OW2: int; P2: int
    Q: int; Qpad: int; Kc2: int; C2: int
    FC: int; OUT: int; NP: int


def _model_geometry(params):
    c, h, w = params["image_shape"]
    (w1, _, s1), (w2, _, s2) = params["convs"]
    C1, cin1, k1, _ = w1.shape
    C2, cin2, k2, _ = w2.shape
    assert cin1 == c and cin2 == C1
    # Space-to-depth based im2col needs these divisibilities (Atari: 8/4, 84).
    assert k1 % s1 == 0 and h % s1 == 0 and w % s1 == 0, (k1, s1, h, w)
    a1 = k1 // s1
    HB, WB = h // s1, w // s1
    OH1, OW1 = HB - a1 + 1, WB - a1 + 1            # == (h-k1)//s1 + 1 etc.
    OH2, OW2 = (OH1 - k2) // s2 + 1, (OW1 - k2) // s2 + 1
    assert OH2 >= 1 and OW2 >= 1
    P1, P2 = OH1 * OW1, OH2 * OW2
    Kc1, Kc2 = c * k1 * k1, k2 * k2 * C1
    # conv2 "strip": pseudo-row q = oh2*s2*OW1 + ow2*s2, valid only at P2 spots.
    Q = (OH2 - 1) * s2 * OW1 + (OW2 - 1) * s2 + 1
    Qpad = _round_up(Q, 8)
    sh_max = (k2 - 1) * OW1 + (k2 - 1)
    P1pad = _round_up(max(P1, sh_max + Qpad), 8)
    # Invariants that keep zero-padded / strip-waste rows away from the head.
    assert (Q - 1) + sh_max < P1, "valid conv2 rows would read padded conv1 rows"
    assert sh_max + Qpad <= P1pad and P1 <= P1pad
    FC = params["fc1_w"].shape[1]
    OUT = params["fc2_w"].shape[1]
    NP = _round_up(OUT, 128)
    assert params["fc1_w"].shape[0] == C2 * P2
    return _Geom(C=c, H=h, W=w, k1=k1, s1=s1, a1=a1, HB=HB, WB=WB, OH1=OH1,
                 OW1=OW1, P1=P1, P1pad=P1pad, Kc1=Kc1, C1=C1, k2=k2, s2=s2,
                 OH2=OH2, OW2=OW2, P2=P2, Q=Q, Qpad=Qpad, Kc2=Kc2, C2=C2,
                 FC=FC, OUT=OUT, NP=NP)


def _vmem_bt_cap(g):
    """Cap images/step so in-kernel temporaries (+ the double-buffered uint8
    input block) stay well under VMEM (v7x has only 64 MiB physical)."""
    per_img = (2 * g.P1pad * g.Kc1          # uint8 im2col block, double buffered
               + 6 * g.P1pad * g.Kc1        # f32 + bf16 casts of it
               + 6 * g.P1pad * g.C1         # conv1 activations (f32 + bf16)
               + 8 * g.P1pad * g.C2)        # conv2 strip (f32 value + scratch)
    return max(1, (24 << 20) // per_img)


def _pick_batch_tile(n, cap):
    """Largest tile dividing the batch (fills MXU rows, amortizes the ~0.35us
    per-grid-step cost); prefer >=2 grid steps so v7x's two TensorCores both
    get work, as long as that does not shrink the tile by more than 8x."""
    cap = max(1, min(n, 128, cap))
    divisors = [d for d in range(1, cap + 1) if n % d == 0]
    largest = max(divisors)
    multi = [d for d in divisors if n // d >= 2]
    if multi and 8 * max(multi) >= largest:
        return max(multi)
    return largest


# ------------------------------ fused kernel -------------------------------

def _fused_dqn_kernel(x_ref, w1_ref, b1_ref, w2_ref, b2_ref,
                      fw1_ref, fb1_ref, fw2_ref, fb2_ref,
                      out_ref, act2_scr, *, g, bt):
    """One grid step = `bt` images, everything VMEM resident.

    x_ref   : [bt*P1pad, Kc1] u8    conv1 im2col rows (row p = oh1*OW1 + ow1)
    w1_ref  : [Kc1, C1]       bf16  conv1 weight (1/255 folded in)
    w2_ref  : [k2*k2*C1, C2]  bf16  conv2 weight, row blocks ordered (kh, kw)
    fw1_ref : [P2*C2, FC]     bf16  fc1 weight, rows ordered (spatial, channel)
    fw2_ref : [FC, NP]        bf16  fc2 weight, lane padded
    biases  : f32 [1, N]
    out_ref : [1, bt, NP]     f32   one dense [bt, NP] store per step
    act2_scr: [L, C2]         f32   conv2 strip scratch, L = (bt-1)*P1pad+Qpad
    """
    L = (bt - 1) * g.P1pad + g.Qpad

    # ---- conv1: ONE MXU matmul for all bt images (K = C*k1*k1 via host
    #      im2col).  One dtype conversion for the whole block; 0..255 is exact
    #      in bf16 and the 1/255 scale lives in w1.  (u8 -> f32 -> bf16 keeps
    #      the conversion on well-supported lowering paths.)
    x = x_ref[...].astype(jnp.float32).astype(jnp.bfloat16)
    a1 = jnp.dot(x, w1_ref[...], preferred_element_type=jnp.float32)
    act1 = jnp.maximum(a1 + b1_ref[...], 0.0).astype(jnp.bfloat16)  # [bt*P1pad, C1]

    # ---- conv2: k2*k2 shifted matmuls over the whole stacked activation
    #      buffer (M is batched over all bt images).  Shifted windows never
    #      mix images for the rows that feed the fc head (asserted at pack
    #      time).  Weight tiles are sliced straight from the VMEM ref.
    # TODO(synk): lane-concatenating the k2*k2 shifted slices into one
    # K = k2*k2*C1 matmul and skipping the ~4x strip-waste rows is the next
    # MXU-depth optimization once this is throughput bound (review items 5/9).
    acc2 = jnp.zeros((L, g.C2), jnp.float32)
    for kh in range(g.k2):
        for kw in range(g.k2):
            blk = kh * g.k2 + kw
            sh = kh * g.OW1 + kw
            acc2 += jnp.dot(act1[sh:sh + L, :],
                            w2_ref[blk * g.C1:(blk + 1) * g.C1, :],
                            preferred_element_type=jnp.float32)
    act2_scr[...] = acc2            # raw (pre-bias) conv2 strip -> VMEM scratch

    # ---- fc head, batched over all bt images.  The P2 valid conv2 rows of
    #      image b sit at scratch row b*P1pad + q; one strided read per
    #      spatial position yields a [bt, C2] operand so every fc1 matmul has
    #      M = bt.  Bias/ReLU are applied only to the gathered rows.
    # TODO(synk): folding the P2 gathered rows into a single [bt, P2*C2]
    # operand (one K = P2*C2 fc1 matmul) is the remaining step of review item 2.
    b2 = b2_ref[...]
    h = jnp.zeros((bt, g.FC), jnp.float32)
    for p in range(g.P2):
        oh2, ow2 = divmod(p, g.OW2)
        qp = oh2 * g.s2 * g.OW1 + ow2 * g.s2
        rows = act2_scr[pl.ds(qp, bt, stride=g.P1pad), :]          # [bt, C2]
        rows = jnp.maximum(rows + b2, 0.0).astype(jnp.bfloat16)
        h += jnp.dot(rows, fw1_ref[p * g.C2:(p + 1) * g.C2, :],
                     preferred_element_type=jnp.float32)
    h = jnp.maximum(h + fb1_ref[...], 0.0).astype(jnp.bfloat16)     # [bt, FC]

    # ---- fc2 (lane padded to NP) -> one dense [bt, NP] store per grid step.
    qv = jnp.dot(h, fw2_ref[...], preferred_element_type=jnp.float32) + fb2_ref[...]
    out_ref[0, :, :] = qv


def _fused_forward_call(g, bt, n_imgs):
    steps = n_imgs // bt
    L = (bt - 1) * g.P1pad + g.Qpad

    def wspec(shape):
        # TODO(synk): at real DQN sizes on v7x, single-buffer these constant
        # weight blocks (pipeline_mode=pl.Buffered(1)) to save VMEM.
        return pl.BlockSpec(shape, lambda i: (0, 0))

    in_specs = [
        pl.BlockSpec((bt * g.P1pad, g.Kc1), lambda i: (i, 0)),   # im2col uint8
        wspec((g.Kc1, g.C1)), wspec((1, g.C1)),                  # conv1
        wspec((g.Kc2, g.C2)), wspec((1, g.C2)),                  # conv2
        wspec((g.P2 * g.C2, g.FC)), wspec((1, g.FC)),            # fc1
        wspec((g.FC, g.NP)), wspec((1, g.NP)),                   # fc2
    ]
    out_specs = pl.BlockSpec((1, bt, g.NP), lambda i: (i, 0, 0))

    flops = 2 * steps * (bt * g.P1pad * g.Kc1 * g.C1
                         + L * g.Kc2 * g.C2
                         + bt * g.P2 * g.C2 * g.FC
                         + bt * g.FC * g.NP)
    weight_bytes = 2 * (g.Kc1 * g.C1 + g.Kc2 * g.C2
                        + g.P2 * g.C2 * g.FC + g.FC * g.NP)
    bytes_accessed = n_imgs * g.P1pad * g.Kc1 + n_imgs * g.NP * 4 + weight_bytes

    return pl.pallas_call(
        functools.partial(_fused_dqn_kernel, g=g, bt=bt),
        out_shape=jax.ShapeDtypeStruct((steps, bt, g.NP), jnp.float32),
        grid=(steps,),
        in_specs=in_specs,
        out_specs=out_specs,
        scratch_shapes=[pltpu.VMEM((L, g.C2), jnp.float32)],
        compiler_params=pltpu.CompilerParams(
            dimension_semantics=("parallel",),        # megacore / 2-TC split
            vmem_limit_bytes=48 * 1024 * 1024),
        cost_estimate=pl.CostEstimate(flops=int(flops), transcendentals=0,
                                      bytes_accessed=int(bytes_accessed)),
    )


# -------------------------- host-side packing glue -------------------------

def _pack_weights(params, g):
    """bf16 / lane-padded weights laid out so the kernel never transposes."""
    (w1, b1, _), (w2, b2, _) = params["convs"]
    # conv1: [C1, C, k1, k1] -> rows ordered (ah, aw, ci, rh, rw) to match the
    # host im2col column order; 1/255 folded in.
    w1p = w1.reshape(g.C1, g.C, g.a1, g.s1, g.a1, g.s1)
    w1p = w1p.transpose(2, 4, 1, 3, 5, 0).reshape(g.Kc1, g.C1)
    w1p = (w1p * (1.0 / 255.0)).astype(jnp.bfloat16)
    b1p = b1.reshape(1, g.C1).astype(jnp.float32)
    # conv2: [C2, C1, k2, k2] -> row blocks ordered (kh, kw), channel inside.
    w2p = w2.transpose(2, 3, 1, 0).reshape(g.Kc2, g.C2).astype(jnp.bfloat16)
    b2p = b2.reshape(1, g.C2).astype(jnp.float32)
    # fc1: torch flattens conv_out as (c2, oh2, ow2); reorder the weight rows
    # to (spatial, channel) so the gathered activations need no transpose.
    fw1p = params["fc1_w"].reshape(g.C2, g.P2, g.FC).transpose(1, 0, 2)
    fw1p = fw1p.reshape(g.P2 * g.C2, g.FC).astype(jnp.bfloat16)
    fb1p = params["fc1_b"].reshape(1, g.FC).astype(jnp.float32)
    # fc2: lane-pad the narrow output dim to a multiple of 128 (dense stores).
    fw2p = jnp.zeros((g.FC, g.NP), jnp.float32).at[:, :g.OUT].set(params["fc2_w"])
    fw2p = fw2p.astype(jnp.bfloat16)
    fb2p = jnp.zeros((1, g.NP), jnp.float32).at[:, :g.OUT].set(
        params["fc2_b"].reshape(1, g.OUT))
    return (w1p, b1p, w2p, b2p, fw1p, fb1p, fw2p, fb2p)


def _im2col_u8(obs, g):
    """[N, C, H, W] uint8 -> [N*P1pad, Kc1] uint8 conv1 im2col:
    row p = oh1*OW1 + ow1, column block order (ah, aw, ci, rh, rw).
    Only (k1/s1)^2 x byte amplification; rows zero padded per image."""
    n = obs.shape[0]
    x = obs.reshape(n, g.C, g.HB, g.s1, g.WB, g.s1)
    x = x.transpose(0, 2, 4, 1, 3, 5).reshape(n, g.HB, g.WB, g.C * g.s1 * g.s1)
    cols = [x[:, ah:ah + g.OH1, aw:aw + g.OW1, :]
            for ah in range(g.a1) for aw in range(g.a1)]
    p = jnp.concatenate(cols, axis=-1).reshape(n, g.P1, g.Kc1)
    p = jnp.pad(p, ((0, 0), (0, g.P1pad - g.P1), (0, 0)))
    return p.reshape(n * g.P1pad, g.Kc1)


# ------------------------------ model setup --------------------------------

def init_atari_dqn_params(key, image_shape, output_size, fc_size=64,
                          channels=(32, 64), kernel_sizes=(8, 5),
                          strides=(4, 2)):
    c, h, w = image_shape
    keys = jax.random.split(key, 2 * len(channels) + 4)
    ki = 0
    convs = []
    in_c, hh, ww = c, h, w
    for out_c, k, s in zip(channels, kernel_sizes, strides):
        fan_in = in_c * k * k
        bound = 1.0 / math.sqrt(fan_in)
        wgt = jax.random.uniform(keys[ki], (out_c, in_c, k, k), jnp.float32,
                                 -bound, bound); ki += 1
        bia = jax.random.uniform(keys[ki], (out_c,), jnp.float32,
                                 -bound, bound); ki += 1
        convs.append((wgt, bia, s))
        in_c = out_c
        hh = (hh - k) // s + 1
        ww = (ww - k) // s + 1
    conv_out_size = in_c * hh * ww

    b1 = 1.0 / math.sqrt(conv_out_size)
    fc1_w = jax.random.uniform(keys[ki], (conv_out_size, fc_size), jnp.float32,
                               -b1, b1); ki += 1
    fc1_b = jax.random.uniform(keys[ki], (fc_size,), jnp.float32, -b1, b1); ki += 1
    b2 = 1.0 / math.sqrt(fc_size)
    fc2_w = jax.random.uniform(keys[ki], (fc_size, output_size), jnp.float32,
                               -b2, b2); ki += 1
    fc2_b = jax.random.uniform(keys[ki], (output_size,), jnp.float32, -b2, b2)

    return {
        "image_shape": image_shape,
        "convs": convs,
        "fc1_w": fc1_w, "fc1_b": fc1_b,
        "fc2_w": fc2_w, "fc2_b": fc2_b,
    }


def atari_dqn_forward(params, observation, prev_action=None, prev_reward=None):
    """Mirrors AtariDqnModel.forward (img/255 -> convs -> MLP head), fully
    fused into one Pallas call.  Leading dims ([], [B] or [T, B]) restored."""
    del prev_action, prev_reward            # unused by the torch forward
    c, h, w = params["image_shape"]
    lead = observation.shape[:-3]
    obs = observation.reshape((-1, c, h, w))
    assert obs.dtype == jnp.uint8, "expects uint8 Atari frames"
    # TODO(synk): float observations would need the 1/255 un-folded from w1.

    n = obs.shape[0]
    g = _model_geometry(params)
    bt = _pick_batch_tile(n, _vmem_bt_cap(g))
    packed = _pack_weights(params, g)
    x = _im2col_u8(obs, g)

    out = _fused_forward_call(g, bt, n)(x, *packed)      # [steps, bt, NP] f32
    q = out.reshape(n, g.NP)[:, :g.OUT]
    return q.reshape(lead + (g.OUT,))


# ------------------------------ f32 reference ------------------------------

def atari_dqn_reference(params, observation):
    """Pure-JAX f32 reference of the torch module (for verification)."""
    c, h, w = params["image_shape"]
    lead = observation.shape[:-3]
    x = observation.astype(jnp.float32).reshape((-1, c, h, w)) * (1.0 / 255.0)
    for (wgt, bia, s) in params["convs"]:
        x = jax.lax.conv_general_dilated(
            x, wgt, window_strides=(s, s), padding="VALID",
            dimension_numbers=("NCHW", "OIHW", "NCHW"),
            precision=jax.lax.Precision.HIGHEST)
        x = jnp.maximum(x + bia.reshape(1, -1, 1, 1), 0.0)
    x = x.reshape(x.shape[0], -1)
    x = jnp.maximum(jnp.dot(x, params["fc1_w"],
                            precision=jax.lax.Precision.HIGHEST)
                    + params["fc1_b"], 0.0)
    q = jnp.dot(x, params["fc2_w"],
                precision=jax.lax.Precision.HIGHEST) + params["fc2_b"]
    return q.reshape(lead + (q.shape[-1],))


# --------------------------------- main ------------------------------------

if __name__ == "__main__":
    key = jax.random.PRNGKey(0)
    k_param, k_obs, k_obs2 = jax.random.split(key, 3)

    B, C, H, W = 2, 4, 32, 32
    OUTPUT_SIZE = 6
    FC_SIZE = 64

    params = init_atari_dqn_params(k_param, (C, H, W), OUTPUT_SIZE,
                                   fc_size=FC_SIZE)

    observation = jax.random.randint(k_obs, (B, C, H, W), 0, 256,
                                     dtype=jnp.int32).astype(jnp.uint8)
    prev_action = jnp.zeros((B,), jnp.int32)
    prev_reward = jnp.zeros((B,), jnp.float32)

    apply_fn = jax.jit(functools.partial(atari_dqn_forward, params))
    q = jax.block_until_ready(apply_fn(observation, prev_action, prev_reward))
    assert q.shape == (B, OUTPUT_SIZE), q.shape
    assert q.dtype == jnp.float32

    q_ref = jax.block_until_ready(atari_dqn_reference(params, observation))
    err = float(jnp.max(jnp.abs(q - q_ref)))
    assert err < 3e-2, f"max |q - q_ref| = {err}"

    # [T, B] leading dims: exercises bt > 1, the batched-M path and the
    # 2-step "parallel" grid split.
    T2, B2 = 3, 4
    obs2 = jax.random.randint(k_obs2, (T2, B2, C, H, W), 0, 256,
                              dtype=jnp.int32).astype(jnp.uint8)
    q2 = jax.block_until_ready(
        jax.jit(functools.partial(atari_dqn_forward, params))(obs2, None, None))
    assert q2.shape == (T2, B2, OUTPUT_SIZE), q2.shape
    q2_ref = jax.block_until_ready(atari_dqn_reference(params, obs2))
    err2 = float(jnp.max(jnp.abs(q2 - q2_ref)))
    assert err2 < 3e-2, f"max |q2 - q2_ref| = {err2}"

    print("KERNEL_OK")
</pallas_src>

<mosaic_0001>
module attributes {stable_mosaic.version = 11 : i64} {
  func.func @_fused_dqn_kernel(%arg0: i32, %arg1: memref<56x256xi8, #tpu.memory_space<vmem>>, %arg2: memref<256x32xbf16, #tpu.memory_space<vmem>>, %arg3: memref<1x32xf32, #tpu.memory_space<vmem>>, %arg4: memref<800x64xbf16, #tpu.memory_space<vmem>>, %arg5: memref<1x64xf32, #tpu.memory_space<vmem>>, %arg6: memref<256x64xbf16, #tpu.memory_space<vmem>>, %arg7: memref<1x64xf32, #tpu.memory_space<vmem>>, %arg8: memref<64x128xbf16, #tpu.memory_space<vmem>>, %arg9: memref<1x128xf32, #tpu.memory_space<vmem>>, %arg10: memref<1x1x128xf32, #tpu.memory_space<vmem>>, %arg11: memref<24x64xf32, #tpu.memory_space<vmem>>) attributes {dimension_semantics = [#tpu.dimension_semantics<parallel>], iteration_bounds = array<i64: 2>, scalar_prefetch = 0 : i64, scratch_operands = 1 : i64, tpu.core_type = #tpu.core_type<tc>, window_params = [{transform_indices = @transform_0, window_bounds = array<i64: 56, 256>}, {pipeline_mode = #tpu.pipeline_mode<synchronous>, transform_indices = @transform_1, window_bounds = array<i64: 256, 32>}, {pipeline_mode = #tpu.pipeline_mode<synchronous>, transform_indices = @transform_2, window_bounds = array<i64: 1, 32>}, {pipeline_mode = #tpu.pipeline_mode<synchronous>, transform_indices = @transform_3, window_bounds = array<i64: 800, 64>}, {pipeline_mode = #tpu.pipeline_mode<synchronous>, transform_indices = @transform_4, window_bounds = array<i64: 1, 64>}, {pipeline_mode = #tpu.pipeline_mode<synchronous>, transform_indices = @transform_5, window_bounds = array<i64: 256, 64>}, {pipeline_mode = #tpu.pipeline_mode<synchronous>, transform_indices = @transform_6, window_bounds = array<i64: 1, 64>}, {pipeline_mode = #tpu.pipeline_mode<synchronous>, transform_indices = @transform_7, window_bounds = array<i64: 64, 128>}, {pipeline_mode = #tpu.pipeline_mode<synchronous>, transform_indices = @transform_8, window_bounds = array<i64: 1, 128>}, {transform_indices = @transform_9, window_bounds = array<i64: 1, 1, 128>}]} {
    %c0 = arith.constant 0 : index
    %c0_0 = arith.constant 0 : index
    %0 = vector.load %arg1[%c0, %c0_0] : memref<56x256xi8, #tpu.memory_space<vmem>>, vector<56x256xi8>
    %1 = arith.uitofp %0 : vector<56x256xi8> to vector<56x256xf32>
    %2 = arith.truncf %1 : vector<56x256xf32> to vector<56x256xbf16>
    %c0_1 = arith.constant 0 : index
    %c0_2 = arith.constant 0 : index
    %3 = vector.load %arg2[%c0_1, %c0_2] : memref<256x32xbf16, #tpu.memory_space<vmem>>, vector<256x32xbf16>
    %cst = arith.constant dense<0.000000e+00> : vector<56x32xf32>
    %4 = tpu.matmul %2, %3, %cst {dimension_numbers = #tpu.dot_dimension_numbers<[1], [0], [0], [1], [0, 0, 1, 1], [], []>} : vector<56x256xbf16>, vector<256x32xbf16>, vector<56x32xf32> -> vector<56x32xf32>
    %c0_3 = arith.constant 0 : index
    %c0_4 = arith.constant 0 : index
    %5 = vector.load %arg3[%c0_3, %c0_4] : memref<1x32xf32, #tpu.memory_space<vmem>>, vector<1x32xf32>
    %6 = vector.broadcast %5 : vector<1x32xf32> to vector<56x32xf32>
    %7 = arith.addf %4, %6 : vector<56x32xf32>
    %cst_5 = arith.constant 0.000000e+00 : f32
    %8 = vector.broadcast %cst_5 : f32 to vector<56x32xf32>
    %9 = arith.maximumf %7, %8 : vector<56x32xf32>
    %10 = arith.truncf %9 : vector<56x32xf32> to vector<56x32xbf16>
    %cst_6 = arith.constant 0.000000e+00 : f32
    %11 = vector.broadcast %cst_6 : f32 to vector<24x64xf32>
    %12 = vector.extract_strided_slice %10 {offsets = [0, 0], sizes = [24, 32], strides = [1, 1]} : vector<56x32xbf16> to vector<24x32xbf16>
    %c0_7 = arith.constant 0 : index
    %c0_8 = arith.constant 0 : index
    %13 = vector.load %arg4[%c0_7, %c0_8] : memref<800x64xbf16, #tpu.memory_space<vmem>>, vector<32x64xbf16>
    %cst_9 = arith.constant dense<0.000000e+00> : vector<24x64xf32>
    %14 = tpu.matmul %12, %13, %cst_9 {dimension_numbers = #tpu.dot_dimension_numbers<[1], [0], [0], [1], [0, 0, 1, 1], [], []>} : vector<24x32xbf16>, vector<32x64xbf16>, vector<24x64xf32> -> vector<24x64xf32>
    %15 = arith.addf %11, %14 : vector<24x64xf32>
    %16 = vector.extract_strided_slice %10 {offsets = [1, 0], sizes = [24, 32], strides = [1, 1]} : vector<56x32xbf16> to vector<24x32xbf16>
    %c32 = arith.constant 32 : index
    %c0_10 = arith.constant 0 : index
    %17 = vector.load %arg4[%c32, %c0_10] : memref<800x64xbf16, #tpu.memory_space<vmem>>, vector<32x64xbf16>
    %cst_11 = arith.constant dense<0.000000e+00> : vector<24x64xf32>
    %18 = tpu.matmul %16, %17, %cst_11 {dimension_numbers = #tpu.dot_dimension_numbers<[1], [0], [0], [1], [0, 0, 1, 1], [], []>} : vector<24x32xbf16>, vector<32x64xbf16>, vector<24x64xf32> -> vector<24x64xf32>
    %19 = arith.addf %15, %18 : vector<24x64xf32>
    %20 = vector.extract_strided_slice %10 {offsets = [2, 0], sizes = [24, 32], strides = [1, 1]} : vector<56x32xbf16> to vector<24x32xbf16>
    %c64 = arith.constant 64 : index
    %c0_12 = arith.constant 0 : index
    %21 = vector.load %arg4[%c64, %c0_12] : memref<800x64xbf16, #tpu.memory_space<vmem>>, vector<32x64xbf16>
    %cst_13 = arith.constant dense<0.000000e+00> : vector<24x64xf32>
    %22 = tpu.matmul %20, %21, %cst_13 {dimension_numbers = #tpu.dot_dimension_numbers<[1], [0], [0], [1], [0, 0, 1, 1], [], []>} : vector<24x32xbf16>, vector<32x64xbf16>, vector<24x64xf32> -> vector<24x64xf32>
    %23 = arith.addf %19, %22 : vector<24x64xf32>
    %24 = vector.extract_strided_slice %10 {offsets = [3, 0], sizes = [24, 32], strides = [1, 1]} : vector<56x32xbf16> to vector<24x32xbf16>
    %c96 = arith.constant 96 : index
    %c0_14 = arith.constant 0 : index
    %25 = vector.load %arg4[%c96, %c0_14] : memref<800x64xbf16, #tpu.memory_space<vmem>>, vector<32x64xbf16>
    %cst_15 = arith.constant dense<0.000000e+00> : vector<24x64xf32>
    %26 = tpu.matmul %24, %25, %cst_15 {dimension_numbers = #tpu.dot_dimension_numbers<[1], [0], [0], [1], [0, 0, 1, 1], [], []>} : vector<24x32xbf16>, vector<32x64xbf16>, vector<24x64xf32> -> vector<24x64xf32>
    %27 = arith.addf %23, %26 : vector<24x64xf32>
    %28 = vector.extract_strided_slice %10 {offsets = [4, 0], sizes = [24, 32], strides = [1, 1]} : vector<56x32xbf16> to vector<24x32xbf16>
    %c128 = arith.constant 128 : index
    %c0_16 = arith.constant 0 : index
    %29 = vector.load %arg4[%c128, %c0_16] : memref<800x64xbf16, #tpu.memory_space<vmem>>, vector<32x64xbf16>
    %cst_17 = arith.constant dense<0.000000e+00> : vector<24x64xf32>
    %30 = tpu.matmul %28, %29, %cst_17 {dimension_numbers = #tpu.dot_dimension_numbers<[1], [0], [0], [1], [0, 0, 1, 1], [], []>} : vector<24x32xbf16>, vector<32x64xbf16>, vector<24x64xf32> -> vector<24x64xf32>
    %31 = arith.addf %27, %30 : vector<24x64xf32>
    %32 = vector.extract_strided_slice %10 {offsets = [7, 0], sizes = [24, 32], strides = [1, 1]} : vector<56x32xbf16> to vector<24x32xbf16>
    %c160 = arith.constant 160 : index
    %c0_18 = arith.constant 0 : index
    %33 = vector.load %arg4[%c160, %c0_18] : memref<800x64xbf16, #tpu.memory_space<vmem>>, vector<32x64xbf16>
    %cst_19 = arith.constant dense<0.000000e+00> : vector<24x64xf32>
    %34 = tpu.matmul %32, %33, %cst_19 {dimension_numbers = #tpu.dot_dimension_numbers<[1], [0], [0], [1], [0, 0, 1, 1], [], []>} : vector<24x32xbf16>, vector<32x64xbf16>, vector<24x64xf32> -> vector<24x64xf32>
    %35 = arith.addf %31, %34 : vector<24x64xf32>
    %36 = vector.extract_strided_slice %10 {offsets = [8, 0], sizes = [24, 32], strides = [1, 1]} : vector<56x32xbf16> to vector<24x32xbf16>
    %c192 = arith.constant 192 : index
    %c0_20 = arith.constant 0 : index
    %37 = vector.load %arg4[%c192, %c0_20] : memref<800x64xbf16, #tpu.memory_space<vmem>>, vector<32x64xbf16>
    %cst_21 = arith.constant dense<0.000000e+00> : vector<24x64xf32>
    %38 = tpu.matmul %36, %37, %cst_21 {dimension_numbers = #tpu.dot_dimension_numbers<[1], [0], [0], [1], [0, 0, 1, 1], [], []>} : vector<24x32xbf16>, vector<32x64xbf16>, vector<24x64xf32> -> vector<24x64xf32>
    %39 = arith.addf %35, %38 : vector<24x64xf32>
    %40 = vector.extract_strided_slice %10 {offsets = [9, 0], sizes = [24, 32], strides = [1, 1]} : vector<56x32xbf16> to vector<24x32xbf16>
    %c224 = arith.constant 224 : index
    %c0_22 = arith.constant 0 : index
    %41 = vector.load %arg4[%c224, %c0_22] : memref<800x64xbf16, #tpu.memory_space<vmem>>, vector<32x64xbf16>
    %cst_23 = arith.constant dense<0.000000e+00> : vector<24x64xf32>
    %42 = tpu.matmul %40, %41, %cst_23 {dimension_numbers = #tpu.dot_dimension_numbers<[1], [0], [0], [1], [0, 0, 1, 1], [], []>} : vector<24x32xbf16>, vector<32x64xbf16>, vector<24x64xf32> -> vector<24x64xf32>
    %43 = arith.addf %39, %42 : vector<24x64xf32>
    %44 = vector.extract_strided_slice %10 {offsets = [10, 0], sizes = [24, 32], strides = [1, 1]} : vector<56x32xbf16> to vector<24x32xbf16>
    %c256 = arith.constant 256 : index
    %c0_24 = arith.constant 0 : index
    %45 = vector.load %arg4[%c256, %c0_24] : memref<800x64xbf16, #tpu.memory_space<vmem>>, vector<32x64xbf16>
    %cst_25 = arith.constant dense<0.000000e+00> : vector<24x64xf32>
    %46 = tpu.matmul %44, %45, %cst_25 {dimension_numbers = #tpu.dot_dimension_numbers<[1], [0], [0], [1], [0, 0, 1, 1], [], []>} : vector<24x32xbf16>, vector<32x64xbf16>, vector<24x64xf32> -> vector<24x64xf32>
    %47 = arith.addf %43, %46 : vector<24x64xf32>
    %48 = vector.extract_strided_slice %10 {offsets = [11, 0], sizes = [24, 32], strides = [1, 1]} : vector<56x32xbf16> to vector<24x32xbf16>
    %c288 = arith.constant 288 : index
    %c0_26 = arith.constant 0 : index
    %49 = vector.load %arg4[%c288, %c0_26] : memref<800x64xbf16, #tpu.memory_space<vmem>>, vector<32x64xbf16>
    %cst_27 = arith.constant dense<0.000000e+00> : vector<24x64xf32>
    %50 = tpu.matmul %48, %49, %cst_27 {dimension_numbers = #tpu.dot_dimension_numbers<[1], [0], [0], [1], [0, 0, 1, 1], [], []>} : vector<24x32xbf16>, vector<32x64xbf16>, vector<24x64xf32> -> vector<24x64xf32>
    %51 = arith.addf %47, %50 : vector<24x64xf32>
    %52 = vector.extract_strided_slice %10 {offsets = [14, 0], sizes = [24, 32], strides = [1, 1]} : vector<56x32xbf16> to vector<24x32xbf16>
    %c320 = arith.constant 320 : index
    %c0_28 = arith.constant 0 : index
    %53 = vector.load %arg4[%c320, %c0_28] : memref<800x64xbf16, #tpu.memory_space<vmem>>, vector<32x64xbf16>
    %cst_29 = arith.constant dense<0.000000e+00> : vector<24x64xf32>
    %54 = tpu.matmul %52, %53, %cst_29 {dimension_numbers = #tpu.dot_dimension_numbers<[1], [0], [0], [1], [0, 0, 1, 1], [], []>} : vector<24x32xbf16>, vector<32x64xbf16>, vector<24x64xf32> -> vector<24x64xf32>
    %55 = arith.addf %51, %54 : vector<24x64xf32>
    %56 = vector.extract_strided_slice %10 {offsets = [15, 0], sizes = [24, 32], strides = [1, 1]} : vector<56x32xbf16> to vector<24x32xbf16>
    %c352 = arith.constant 352 : index
    %c0_30 = arith.constant 0 : index
    %57 = vector.load %arg4[%c352, %c0_30] : memref<800x64xbf16, #tpu.memory_space<vmem>>, vector<32x64xbf16>
    %cst_31 = arith.constant dense<0.000000e+00> : vector<24x64xf32>
    %58 = tpu.matmul %56, %57, %cst_31 {dimension_numbers = #tpu.dot_dimension_numbers<[1], [0], [0], [1], [0, 0, 1, 1], [], []>} : vector<24x32xbf16>, vector<32x64xbf16>, vector<24x64xf32> -> vector<24x64xf32>
    %59 = arith.addf %55, %58 : vector<24x64xf32>
    %60 = vector.extract_strided_slice %10 {offsets = [16, 0], sizes = [24, 32], strides = [1, 1]} : vector<56x32xbf16> to vector<24x32xbf16>
    %c384 = arith.constant 384 : index
    %c0_32 = arith.constant 0 : index
    %61 = vector.load %arg4[%c384, %c0_32] : memref<800x64xbf16, #tpu.memory_space<vmem>>, vector<32x64xbf16>
    %cst_33 = arith.constant dense<0.000000e+00> : vector<24x64xf32>
    %62 = tpu.matmul %60, %61, %cst_33 {dimension_numbers = #tpu.dot_dimension_numbers<[1], [0], [0], [1], [0, 0, 1, 1], [], []>} : vector<24x32xbf16>, vector<32x64xbf16>, vector<24x64xf32> -> vector<24x64xf32>
    %63 = arith.addf %59, %62 : vector<24x64xf32>
    %64 = vector.extract_strided_slice %10 {offsets = [17, 0], sizes = [24, 32], strides = [1, 1]} : vector<56x32xbf16> to vector<24x32xbf16>
    %c416 = arith.constant 416 : index
    %c0_34 = arith.constant 0 : index
    %65 = vector.load %arg4[%c416, %c0_34] : memref<800x64xbf16, #tpu.memory_space<vmem>>, vector<32x64xbf16>
    %cst_35 = arith.constant dense<0.000000e+00> : vector<24x64xf32>
    %66 = tpu.matmul %64, %65, %cst_35 {dimension_numbers = #tpu.dot_dimension_numbers<[1], [0], [0], [1], [0, 0, 1, 1], [], []>} : vector<24x32xbf16>, vector<32x64xbf16>, vector<24x64xf32> -> vector<24x64xf32>
    %67 = arith.addf %63, %66 : vector<24x64xf32>
    %68 = vector.extract_strided_slice %10 {offsets = [18, 0], sizes = [24, 32], strides = [1, 1]} : vector<56x32xbf16> to vector<24x32xbf16>
    %c448 = arith.constant 448 : index
    %c0_36 = arith.constant 0 : index
    %69 = vector.load %arg4[%c448, %c0_36] : memref<800x64xbf16, #tpu.memory_space<vmem>>, vector<32x64xbf16>
    %cst_37 = arith.constant dense<0.000000e+00> : vector<24x64xf32>
    %70 = tpu.matmul %68, %69, %cst_37 {dimension_numbers = #tpu.dot_dimension_numbers<[1], [0], [0], [1], [0, 0, 1, 1], [], []>} : vector<24x32xbf16>, vector<32x64xbf16>, vector<24x64xf32> -> vector<24x64xf32>
    %71 = arith.addf %67, %70 : vector<24x64xf32>
    %72 = vector.extract_strided_slice %10 {offsets = [21, 0], sizes = [24, 32], strides = [1, 1]} : vector<56x32xbf16> to vector<24x32xbf16>
    %c480 = arith.constant 480 : index
    %c0_38 = arith.constant 0 : index
    %73 = vector.load %arg4[%c480, %c0_38] : memref<800x64xbf16, #tpu.memory_space<vmem>>, vector<32x64xbf16>
    %cst_39 = arith.constant dense<0.000000e+00> : vector<24x64xf32>
    %74 = tpu.matmul %72, %73, %cst_39 {dimension_numbers = #tpu.dot_dimension_numbers<[1], [0], [0], [1], [0, 0, 1, 1], [], []>} : vector<24x32xbf16>, vector<32x64xbf16>, vector<24x64xf32> -> vector<24x64xf32>
    %75 = arith.addf %71, %74 : vector<24x64xf32>
    %76 = vector.extract_strided_slice %10 {offsets = [22, 0], sizes = [24, 32], strides = [1, 1]} : vector<56x32xbf16> to vector<24x32xbf16>
    %c512 = arith.constant 512 : index
    %c0_40 = arith.constant 0 : index
    %77 = vector.load %arg4[%c512, %c0_40] : memref<800x64xbf16, #tpu.memory_space<vmem>>, vector<32x64xbf16>
    %cst_41 = arith.constant dense<0.000000e+00> : vector<24x64xf32>
    %78 = tpu.matmul %76, %77, %cst_41 {dimension_numbers = #tpu.dot_dimension_numbers<[1], [0], [0], [1], [0, 0, 1, 1], [], []>} : vector<24x32xbf16>, vector<32x64xbf16>, vector<24x64xf32> -> vector<24x64xf32>
    %79 = arith.addf %75, %78 : vector<24x64xf32>
    %80 = vector.extract_strided_slice %10 {offsets = [23, 0], sizes = [24, 32], strides = [1, 1]} : vector<56x32xbf16> to vector<24x32xbf16>
    %c544 = arith.constant 544 : index
    %c0_42 = arith.constant 0 : index
    %81 = vector.load %arg4[%c544, %c0_42] : memref<800x64xbf16, #tpu.memory_space<vmem>>, vector<32x64xbf16>
    %cst_43 = arith.constant dense<0.000000e+00> : vector<24x64xf32>
    %82 = tpu.matmul %80, %81, %cst_43 {dimension_numbers = #tpu.dot_dimension_numbers<[1], [0], [0], [1], [0, 0, 1, 1], [], []>} : vector<24x32xbf16>, vector<32x64xbf16>, vector<24x64xf32> -> vector<24x64xf32>
    %83 = arith.addf %79, %82 : vector<24x64xf32>
    %84 = vector.extract_strided_slice %10 {offsets = [24, 0], sizes = [24, 32], strides = [1, 1]} : vector<56x32xbf16> to vector<24x32xbf16>
    %c576 = arith.constant 576 : index
    %c0_44 = arith.constant 0 : index
    %85 = vector.load %arg4[%c576, %c0_44] : memref<800x64xbf16, #tpu.memory_space<vmem>>, vector<32x64xbf16>
    %cst_45 = arith.constant dense<0.000000e+00> : vector<24x64xf32>
    %86 = tpu.matmul %84, %85, %cst_45 {dimension_numbers = #tpu.dot_dimension_numbers<[1], [0], [0], [1], [0, 0, 1, 1], [], []>} : vector<24x32xbf16>, vector<32x64xbf16>, vector<24x64xf32> -> vector<24x64xf32>
    %87 = arith.addf %83, %86 : vector<24x64xf32>
    %88 = vector.extract_strided_slice %10 {offsets = [25, 0], sizes = [24, 32], strides = [1, 1]} : vector<56x32xbf16> to vector<24x32xbf16>
    %c608 = arith.constant 608 : index
    %c0_46 = arith.constant 0 : index
    %89 = vector.load %arg4[%c608, %c0_46] : memref<800x64xbf16, #tpu.memory_space<vmem>>, vector<32x64xbf16>
    %cst_47 = arith.constant dense<0.000000e+00> : vector<24x64xf32>
    %90 = tpu.matmul %88, %89, %cst_47 {dimension_numbers = #tpu.dot_dimension_numbers<[1], [0], [0], [1], [0, 0, 1, 1], [], []>} : vector<24x32xbf16>, vector<32x64xbf16>, vector<24x64xf32> -> vector<24x64xf32>
    %91 = arith.addf %87, %90 : vector<24x64xf32>
    %92 = vector.extract_strided_slice %10 {offsets = [28, 0], sizes = [24, 32], strides = [1, 1]} : vector<56x32xbf16> to vector<24x32xbf16>
    %c640 = arith.constant 640 : index
    %c0_48 = arith.constant 0 : index
    %93 = vector.load %arg4[%c640, %c0_48] : memref<800x64xbf16, #tpu.memory_space<vmem>>, vector<32x64xbf16>
    %cst_49 = arith.constant dense<0.000000e+00> : vector<24x64xf32>
    %94 = tpu.matmul %92, %93, %cst_49 {dimension_numbers = #tpu.dot_dimension_numbers<[1], [0], [0], [1], [0, 0, 1, 1], [], []>} : vector<24x32xbf16>, vector<32x64xbf16>, vector<24x64xf32> -> vector<24x64xf32>
    %95 = arith.addf %91, %94 : vector<24x64xf32>
    %96 = vector.extract_strided_slice %10 {offsets = [29, 0], sizes = [24, 32], strides = [1, 1]} : vector<56x32xbf16> to vector<24x32xbf16>
    %c672 = arith.constant 672 : index
    %c0_50 = arith.constant 0 : index
    %97 = vector.load %arg4[%c672, %c0_50] : memref<800x64xbf16, #tpu.memory_space<vmem>>, vector<32x64xbf16>
    %cst_51 = arith.constant dense<0.000000e+00> : vector<24x64xf32>
    %98 = tpu.matmul %96, %97, %cst_51 {dimension_numbers = #tpu.dot_dimension_numbers<[1], [0], [0], [1], [0, 0, 1, 1], [], []>} : vector<24x32xbf16>, vector<32x64xbf16>, vector<24x64xf32> -> vector<24x64xf32>
    %99 = arith.addf %95, %98 : vector<24x64xf32>
    %100 = vector.extract_strided_slice %10 {offsets = [30, 0], sizes = [24, 32], strides = [1, 1]} : vector<56x32xbf16> to vector<24x32xbf16>
    %c704 = arith.constant 704 : index
    %c0_52 = arith.constant 0 : index
    %101 = vector.load %arg4[%c704, %c0_52] : memref<800x64xbf16, #tpu.memory_space<vmem>>, vector<32x64xbf16>
    %cst_53 = arith.constant dense<0.000000e+00> : vector<24x64xf32>
    %102 = tpu.matmul %100, %101, %cst_53 {dimension_numbers = #tpu.dot_dimension_numbers<[1], [0], [0], [1], [0, 0, 1, 1], [], []>} : vector<24x32xbf16>, vector<32x64xbf16>, vector<24x64xf32> -> vector<24x64xf32>
    %103 = arith.addf %99, %102 : vector<24x64xf32>
    %104 = vector.extract_strided_slice %10 {offsets = [31, 0], sizes = [24, 32], strides = [1, 1]} : vector<56x32xbf16> to vector<24x32xbf16>
    %c736 = arith.constant 736 : index
    %c0_54 = arith.constant 0 : index
    %105 = vector.load %arg4[%c736, %c0_54] : memref<800x64xbf16, #tpu.memory_space<vmem>>, vector<32x64xbf16>
    %cst_55 = arith.constant dense<0.000000e+00> : vector<24x64xf32>
    %106 = tpu.matmul %104, %105, %cst_55 {dimension_numbers = #tpu.dot_dimension_numbers<[1], [0], [0], [1], [0, 0, 1, 1], [], []>} : vector<24x32xbf16>, vector<32x64xbf16>, vector<24x64xf32> -> vector<24x64xf32>
    %107 = arith.addf %103, %106 : vector<24x64xf32>
    %108 = vector.extract_strided_slice %10 {offsets = [32, 0], sizes = [24, 32], strides = [1, 1]} : vector<56x32xbf16> to vector<24x32xbf16>
    %c768 = arith.constant 768 : index
    %c0_56 = arith.constant 0 : index
    %109 = vector.load %arg4[%c768, %c0_56] : memref<800x64xbf16, #tpu.memory_space<vmem>>, vector<32x64xbf16>
    %cst_57 = arith.constant dense<0.000000e+00> : vector<24x64xf32>
    %110 = tpu.matmul %108, %109, %cst_57 {dimension_numbers = #tpu.dot_dimension_numbers<[1], [0], [0], [1], [0, 0, 1, 1], [], []>} : vector<24x32xbf16>, vector<32x64xbf16>, vector<24x64xf32> -> vector<24x64xf32>
    %111 = arith.addf %107, %110 : vector<24x64xf32>
    %c0_58 = arith.constant 0 : index
    %c0_59 = arith.constant 0 : index
    %112 = vector.load %arg11[%c0_58, %c0_59] : memref<24x64xf32, #tpu.memory_space<vmem>>, vector<24x64xf32>
    tpu.vector_store %arg11[%c0_58, %c0_59], %111 {strides = array<i32>} : memref<24x64xf32, #tpu.memory_space<vmem>>, vector<24x64xf32>,
    %c0_60 = arith.constant 0 : index
    %c0_61 = arith.constant 0 : index
    %113 = vector.load %arg5[%c0_60, %c0_61] : memref<1x64xf32, #tpu.memory_space<vmem>>, vector<1x64xf32>
    %cst_62 = arith.constant 0.000000e+00 : f32
    %114 = vector.broadcast %cst_62 : f32 to vector<1x64xf32>
    %c0_63 = arith.constant 0 : index
    %c0_64 = arith.constant 0 : index
    %115 = tpu.strided_load %arg11[%c0_63, %c0_64] {strides = array<i32: 56, 1>} : memref<24x64xf32, #tpu.memory_space<vmem>>, vector<1x64xf32>
    %116 = arith.addf %115, %113 : vector<1x64xf32>
    %cst_65 = arith.constant 0.000000e+00 : f32
    %117 = vector.broadcast %cst_65 : f32 to vector<1x64xf32>
    %118 = arith.maximumf %116, %117 : vector<1x64xf32>
    %119 = arith.truncf %118 : vector<1x64xf32> to vector<1x64xbf16>
    %c0_66 = arith.constant 0 : index
    %c0_67 = arith.constant 0 : index
    %120 = vector.load %arg6[%c0_66, %c0_67] : memref<256x64xbf16, #tpu.memory_space<vmem>>, vector<64x64xbf16>
    %cst_68 = arith.constant dense<0.000000e+00> : vector<1x64xf32>
    %121 = tpu.matmul %119, %120, %cst_68 {dimension_numbers = #tpu.dot_dimension_numbers<[1], [0], [0], [1], [0, 0, 1, 1], [], []>} : vector<1x64xbf16>, vector<64x64xbf16>, vector<1x64xf32> -> vector<1x64xf32>
    %122 = arith.addf %114, %121 : vector<1x64xf32>
    %c2 = arith.constant 2 : index
    %c0_69 = arith.constant 0 : index
    %123 = tpu.strided_load %arg11[%c2, %c0_69] {strides = array<i32: 56, 1>} : memref<24x64xf32, #tpu.memory_space<vmem>>, vector<1x64xf32>
    %124 = arith.addf %123, %113 : vector<1x64xf32>
    %cst_70 = arith.constant 0.000000e+00 : f32
    %125 = vector.broadcast %cst_70 : f32 to vector<1x64xf32>
    %126 = arith.maximumf %124, %125 : vector<1x64xf32>
    %127 = arith.truncf %126 : vector<1x64xf32> to vector<1x64xbf16>
    %c64_71 = arith.constant 64 : index
    %c0_72 = arith.constant 0 : index
    %128 = vector.load %arg6[%c64_71, %c0_72] : memref<256x64xbf16, #tpu.memory_space<vmem>>, vector<64x64xbf16>
    %cst_73 = arith.constant dense<0.000000e+00> : vector<1x64xf32>
    %129 = tpu.matmul %127, %128, %cst_73 {dimension_numbers = #tpu.dot_dimension_numbers<[1], [0], [0], [1], [0, 0, 1, 1], [], []>} : vector<1x64xbf16>, vector<64x64xbf16>, vector<1x64xf32> -> vector<1x64xf32>
    %130 = arith.addf %122, %129 : vector<1x64xf32>
    %c14 = arith.constant 14 : index
    %c0_74 = arith.constant 0 : index
    %131 = tpu.strided_load %arg11[%c14, %c0_74] {strides = array<i32: 56, 1>} : memref<24x64xf32, #tpu.memory_space<vmem>>, vector<1x64xf32>
    %132 = arith.addf %131, %113 : vector<1x64xf32>
    %cst_75 = arith.constant 0.000000e+00 : f32
    %133 = vector.broadcast %cst_75 : f32 to vector<1x64xf32>
    %134 = arith.maximumf %132, %133 : vector<1x64xf32>
    %135 = arith.truncf %134 : vector<1x64xf32> to vector<1x64xbf16>
    %c128_76 = arith.constant 128 : index
    %c0_77 = arith.constant 0 : index
    %136 = vector.load %arg6[%c128_76, %c0_77] : memref<256x64xbf16, #tpu.memory_space<vmem>>, vector<64x64xbf16>
    %cst_78 = arith.constant dense<0.000000e+00> : vector<1x64xf32>
    %137 = tpu.matmul %135, %136, %cst_78 {dimension_numbers = #tpu.dot_dimension_numbers<[1], [0], [0], [1], [0, 0, 1, 1], [], []>} : vector<1x64xbf16>, vector<64x64xbf16>, vector<1x64xf32> -> vector<1x64xf32>
    %138 = arith.addf %130, %137 : vector<1x64xf32>
    %c16 = arith.constant 16 : index
    %c0_79 = arith.constant 0 : index
    %139 = tpu.strided_load %arg11[%c16, %c0_79] {strides = array<i32: 56, 1>} : memref<24x64xf32, #tpu.memory_space<vmem>>, vector<1x64xf32>
    %140 = arith.addf %139, %113 : vector<1x64xf32>
    %cst_80 = arith.constant 0.000000e+00 : f32
    %141 = vector.broadcast %cst_80 : f32 to vector<1x64xf32>
    %142 = arith.maximumf %140, %141 : vector<1x64xf32>
    %143 = arith.truncf %142 : vector<1x64xf32> to vector<1x64xbf16>
    %c192_81 = arith.constant 192 : index
    %c0_82 = arith.constant 0 : index
    %144 = vector.load %arg6[%c192_81, %c0_82] : memref<256x64xbf16, #tpu.memory_space<vmem>>, vector<64x64xbf16>
    %cst_83 = arith.constant dense<0.000000e+00> : vector<1x64xf32>
    %145 = tpu.matmul %143, %144, %cst_83 {dimension_numbers = #tpu.dot_dimension_numbers<[1], [0], [0], [1], [0, 0, 1, 1], [], []>} : vector<1x64xbf16>, vector<64x64xbf16>, vector<1x64xf32> -> vector<1x64xf32>
    %146 = arith.addf %138, %145 : vector<1x64xf32>
    %c0_84 = arith.constant 0 : index
    %c0_85 = arith.constant 0 : index
    %147 = vector.load %arg7[%c0_84, %c0_85] : memref<1x64xf32, #tpu.memory_space<vmem>>, vector<1x64xf32>
    %148 = arith.addf %146, %147 : vector<1x64xf32>
    %cst_86 = arith.constant 0.000000e+00 : f32
    %149 = vector.broadcast %cst_86 : f32 to vector<1x64xf32>
    %150 = arith.maximumf %148, %149 : vector<1x64xf32>
    %151 = arith.truncf %150 : vector<1x64xf32> to vector<1x64xbf16>
    %c0_87 = arith.constant 0 : index
    %c0_88 = arith.constant 0 : index
    %152 = vector.load %arg8[%c0_87, %c0_88] : memref<64x128xbf16, #tpu.memory_space<vmem>>, vector<64x128xbf16>
    %cst_89 = arith.constant dense<0.000000e+00> : vector<1x128xf32>
    %153 = tpu.matmul %151, %152, %cst_89 {dimension_numbers = #tpu.dot_dimension_numbers<[1], [0], [0], [1], [0, 0, 1, 1], [], []>} : vector<1x64xbf16>, vector<64x128xbf16>, vector<1x128xf32> -> vector<1x128xf32>
    %c0_90 = arith.constant 0 : index
    %c0_91 = arith.constant 0 : index
    %154 = vector.load %arg9[%c0_90, %c0_91] : memref<1x128xf32, #tpu.memory_space<vmem>>, vector<1x128xf32>
    %155 = arith.addf %153, %154 : vector<1x128xf32>
    %c0_92 = arith.constant 0 : index
    %c0_93 = arith.constant 0 : index
    %c0_94 = arith.constant 0 : index
    %156 = vector.load %arg10[%c0_92, %c0_93, %c0_94] : memref<1x1x128xf32, #tpu.memory_space<vmem>>, vector<1x1x128xf32>
    %157 = vector.shape_cast %156 : vector<1x1x128xf32> to vector<1x128xf32>
    %158 = vector.shape_cast %155 : vector<1x128xf32> to vector<1x1x128xf32>
    tpu.vector_store %arg10[%c0_92, %c0_93, %c0_94], %158 {strides = array<i32>} : memref<1x1x128xf32, #tpu.memory_space<vmem>>, vector<1x1x128xf32>,
    return
  }
  func.func @transform_0(%arg0: i32) -> (i32, i32) {
    %c0_i32 = arith.constant 0 : i32
    %c0_i32_0 = arith.constant 0 : i32
    return %arg0, %c0_i32 : i32, i32
  }
  func.func @transform_1(%arg0: i32) -> (i32, i32) {
    %c0_i32 = arith.constant 0 : i32
    %c0_i32_0 = arith.constant 0 : i32
    %c0_i32_1 = arith.constant 0 : i32
    return %c0_i32, %c0_i32_0 : i32, i32
  }
  func.func @transform_2(%arg0: i32) -> (i32, i32) {
    %c0_i32 = arith.constant 0 : i32
    %c0_i32_0 = arith.constant 0 : i32
    %c0_i32_1 = arith.constant 0 : i32
    return %c0_i32, %c0_i32_0 : i32, i32
  }
  func.func @transform_3(%arg0: i32) -> (i32, i32) {
    %c0_i32 = arith.constant 0 : i32
    %c0_i32_0 = arith.constant 0 : i32
    %c0_i32_1 = arith.constant 0 : i32
    return %c0_i32, %c0_i32_0 : i32, i32
  }
  func.func @transform_4(%arg0: i32) -> (i32, i32) {
    %c0_i32 = arith.constant 0 : i32
    %c0_i32_0 = arith.constant 0 : i32
    %c0_i32_1 = arith.constant 0 : i32
    return %c0_i32, %c0_i32_0 : i32, i32
  }
  func.func @transform_5(%arg0: i32) -> (i32, i32) {
    %c0_i32 = arith.constant 0 : i32
    %c0_i32_0 = arith.constant 0 : i32
    %c0_i32_1 = arith.constant 0 : i32
    return %c0_i32, %c0_i32_0 : i32, i32
  }
  func.func @transform_6(%arg0: i32) -> (i32, i32) {
    %c0_i32 = arith.constant 0 : i32
    %c0_i32_0 = arith.constant 0 : i32
    %c0_i32_1 = arith.constant 0 : i32
    return %c0_i32, %c0_i32_0 : i32, i32
  }
  func.func @transform_7(%arg0: i32) -> (i32, i32) {
    %c0_i32 = arith.constant 0 : i32
    %c0_i32_0 = arith.constant 0 : i32
    %c0_i32_1 = arith.constant 0 : i32
    return %c0_i32, %c0_i32_0 : i32, i32
  }
  func.func @transform_8(%arg0: i32) -> (i32, i32) {
    %c0_i32 = arith.constant 0 : i32
    %c0_i32_0 = arith.constant 0 : i32
    %c0_i32_1 = arith.constant 0 : i32
    return %c0_i32, %c0_i32_0 : i32, i32
  }
  func.func @transform_9(%arg0: i32) -> (i32, i32, i32) {
    %c0_i32 = arith.constant 0 : i32
    %c0_i32_0 = arith.constant 0 : i32
    %c0_i32_1 = arith.constant 0 : i32
    return %arg0, %c0_i32, %c0_i32_0 : i32, i32, i32
  }
}

</mosaic_0001>

<bundles_post_ra>
// kernel: atari_dqn_forward.1
= control target key start
LH: loop header
LB: loop body
LE: loop exit
PB: predicated region body
PF: predicated region fallthrough
CT: control target
= control target key end

     0   :  { %14 = vsyncpa [#allocation4], 0  ;;  %s4655_s0 = inlined_call_operand.vmem [shape: u8[112,256], index: 0, kind: input, shape index: {}]   ;;  %s4656_s1 = inlined_call_operand.vmem [shape: bf16[256,32], index: 1, kind: input, shape index: {}]   ;;  %s4657_s2 = inlined_call_operand.vmem [shape: f32[1,32], index: 2, kind: input, shape index: {}]   ;;  %s4658_s3 = inlined_call_operand.vmem [shape: bf16[800,64], index: 3, kind: input, shape index: {}]   ;;  %s4659_s4 = inlined_call_operand.vmem [shape: f32[1,64], index: 4, kind: input, shape index: {}]   ;;  %s4660_s5 = inlined_call_operand.vmem [shape: bf16[256,64], index: 5, kind: input, shape index: {}]   ;;  %s4661_s6 = inlined_call_operand.vmem [shape: f32[1,64], index: 6, kind: input, shape index: {}]   ;;  %s4662_s7 = inlined_call_operand.vmem [shape: bf16[64,128], index: 7, kind: input, shape index: {}]   ;;  %s4663_s8 = inlined_call_operand.vmem [shape: f32[1,128], index: 8, kind: input, shape index: {}]   ;;  %s4664_s9 = inlined_call_operand.hbm [shape: f32[2,1,128], index: 9, kind: output, shape index: {}]  }
   0x1   :  { %16 = vsyncpa [#allocation4 + $0x1], 0  ;;  %s3951_s30 = smov 0   ;;  %s3953_s10 = smov 0  }
   0x2   :  { %s3955_s11 = smov 0   ;;  %s3957_s12 = smov 0  }
   0x3 LB: > { %s3972_s13 = sadd.s32 4294967295, %s3896_s12   ;;  %s3027_s14 = sadd.s32 4294967294, %s3896_s12   ;;  %s3896_s12 = sphi %s3957_s12, %s4670_s12   ;;  %s3892_s11 = sphi %s3955_s11, %s4669_s11   ;;  %s3888_s10 = sphi %s3953_s10, %s4668_s10   ;;  %s3884_s30 = sphi %s3951_s30, %s4667_s30  }
   0x4   : > { %s3976_s15 = sadd.s32 1, %s3896_s12   ;;  %s223_s16 = sadd.s32 1, %s3892_s11 }
   0x5   : > { %s220_s17 = ssub.s32 %s3896_s12, %s3976_s15  ;;  %p233_p0 = scmp.ne.s32.totalorder %s3892_s11, %s3888_s10 }
   0x6   : > { %p221_p1 = scmp.eq.s32.totalorder %s220_s17, 0  ;;  %p234_p2 = scmp.eq.s32.totalorder %s3972_s13, 1 }
   0x7   : > { %p239_p3 = scmp.ne.s32.totalorder %s3888_s10, %s3884_s30  ;;  %p240_p4 = scmp.eq.s32.totalorder %s3027_s14, 1 }
   0x8   : > { %s3987_s18 = scalar_select %p221_p1, %s3892_s11, %s223_s16  }
   0x9   : > { %p3989_p5 = por %p234_p2, %p233_p0  ;;  %p3993_p6 = por %p240_p4, %p239_p3 }
   0xa   : > { %p3030_p7 = scmp.ge.s32.totalorder %s3896_s12, 1  ;;  %p292_p8 = scmp.lt.s32.totalorder %s3896_s12, 3 }
   0xc   : > { %p293_p9 = pnand %p3030_p7, %p292_p8 }
   0xd   : > { %v3748_v0 = vld [vmem:[%s4656_s1 + $0x40] sm:$0xff] (!%p293_p9)   ;;  %s328_s23 = smul.u32 (!%p293_p9), 7, %s3972_s13  ;;  %v3750_v2 = vld [vmem:[%s4656_s1 + $0x48] sm:$0xff] (!%p293_p9)   ;;  %v3752_v4 = vld [vmem:[%s4656_s1 + $0x50] sm:$0xff] (!%p293_p9)   ;;  %vm633_vm0 = vcmask (!%p293_p9), 261120   ;;  %vm916_vm1 = vcmask (!%p293_p9), 1045504  }
   0xe   : > { %296 = sbr.rel (%p293_p9) target bundleno = 1246 (0x4de), region = 56  ;;  %v3749_v1 = vld [vmem:[%s4656_s1] sm:$0xff] (!%p293_p9)   ;;  %3187 = vmatprep.subr.bf16.mxu0 (!%p293_p9), %v3748_v0  ;;  %v3751_v3 = vld [vmem:[%s4656_s1 + $0x8] sm:$0xff] (!%p293_p9)   ;;  %v3753_v5 = vld [vmem:[%s4656_s1 + $0x10] sm:$0xff] (!%p293_p9)   ;;  %vm605_vm2 = vsmask.f32 (!%p293_p9), 7424 }
   0xf   : > { %p329_p10 = scmp.lt.s32.totalorder (!%p293_p9), %s328_s23, 13  ;;  %3188 = vmatpush3.bf16.msra.mxu0 (!%p293_p9), %v3749_v1  ;;  %v3754_v6 = vld [vmem:[%s4656_s1 + $0x58] sm:$0xff] (!%p293_p9)   ;;  %v3756_v8 = vld [vmem:[%s4656_s1 + $0x60] sm:$0xff] (!%p293_p9)   ;;  %v3758_v10 = vld [vmem:[%s4656_s1 + $0x68] sm:$0xff] (!%p293_p9)   ;;  %vm993_vm3 = vsmask.f32 (!%p293_p9), 4352 }
  0x10   : > { %3189 = vmatprep.subr.bf16.mxu0 (!%p293_p9), %v3750_v2  ;;  %v3755_v7 = vld [vmem:[%s4656_s1 + $0x18] sm:$0xff] (!%p293_p9)   ;;  %v3757_v9 = vld [vmem:[%s4656_s1 + $0x20] sm:$0xff] (!%p293_p9)   ;;  %v3759_v13 = vld [vmem:[%s4656_s1 + $0x28] sm:$0xff] (!%p293_p9)   ;;  %vm1074_vm4 = vcmask (!%p293_p9), 1043456   ;;  %vm758_vm5 = vcmask (!%p293_p9), 1046528   ;;  %vm1404_vm10 = vcmask (!%p293_p9), 1040384  }
  0x11   : > { %v3760_v16 = vld [vmem:[%s4656_s1 + $0x70] sm:$0xff] (!%p293_p9)   ;;  %v3762_v19 = vld [vmem:[%s4656_s1 + $0x78] sm:$0xff] (!%p293_p9)   ;;  %v3764_v38 = vld [vmem:[%s4658_s3 + $0x40] sm:$0xff] (!%p293_p9)   ;;  %vm1483_vm6 = vsmask.f32 (!%p293_p9), 256  ;;  %vm1238_vm12 = vcmask (!%p293_p9), 1042432  }
  0x12   : > { %v3761_v18 = vld [vmem:[%s4656_s1 + $0x30] sm:$0xff] (!%p293_p9)   ;;  %v3763_v22 = vld [vmem:[%s4656_s1 + $0x38] sm:$0xff] (!%p293_p9)   ;;  %3384 = vmatprep.subr.bf16.mxu1 (!%p293_p9), %v3764_v38  ;;  %v3766_v40 = vld [vmem:[%s4658_s3 + $0x48] sm:$0xff] (!%p293_p9)   ;;  %vm1784_vm7 = vsmask.f32 (!%p293_p9), 5376  ;;  %vm1865_vm14 = vcmask (!%p293_p9), 1044480  }
  0x13   : > { %3190 = vmatpush3.bf16.msra.mxu0 (!%p293_p9), %v3751_v3  ;;  %v3765_v39 = vld [vmem:[%s4658_s3 + $0x10] sm:$0xff] (!%p293_p9)   ;;  %3385 = vmatpush3.bf16.msra.mxu1 (!%p293_p9), %v3764_v38  ;;  %v3767_v41 = vld [vmem:[%s4658_s3 + $0x18] sm:$0xff] (!%p293_p9)   ;;  %v4078_v43 = vld [vmem:[%s4658_s3] sm:$0xff] (!%p293_p9)   ;;  %vm1151_vm8 = vsmask.f32 (!%p293_p9), 3328  ;;  %vm2176_vm15 = vcmask (!%p293_p9), 1041408  }
  0x14   : > { %3191 = vmatprep.subr.bf16.mxu0 (!%p293_p9), %v3752_v4  ;;  %3386 = vmatprep.subr.bf16.mxu1 (!%p293_p9), %v3766_v40  ;;  %v3768_v42 = vld [vmem:[%s4658_s3 + $0x50] sm:$0xff] (!%p293_p9)   ;;  %v4084_v45 = vld [vmem:[%s4657_s2] ss:$0 sm:$0xff] (!%p293_p9)  ;;  %vm2255_vm9 = vsmask.f32 (!%p293_p9), 1280  ;;  %s326_s27 = sand.u32 (!%p293_p9), 1, %s3888_s10  }
  0x15   : > { %s4672_s23 = smov (!%p329_p10, %s328_s23), 13  ;;  %vm835_vm11 = vsmask.f32 6400  ;;  %vm1317_vm13 = vsmask.f32 2304  ;;  %s3183_s28 = sshll.u32 %s3972_s13, 4 }
  0x16   : > { %s3186_s25 = sshll.u32 %s4672_s23, 2  ;;  %s327_s29 = scalar_lea.vmem [#allocation3], %s326_s27 }
  0x17   : > { %3192 = vmatpush3.bf16.msra.mxu0 %v3753_v5  ;;  %s4030_s17 = scalar_lea.vmem %s4655_s0, %s3186_s25  ;;  %3387 = vmatpush3.bf16.msra.mxu1 %v3766_v40  ;;  %s2972_s14 = sshll.u32 %s327_s29, 4  ;;  %s4615_s14 = int_to_ptr.vmem [resolvable:$true] %s2972_s14 }
  0x18   : > { %3193 = vmatprep.subr.bf16.mxu0 %v3754_v6  ;;  %v336_v11 = vld [vmem:[%s4030_s17] sm:$0xf]  ;;  %v337_v12 = vld [vmem:[%s4030_s17 + $0x4] sm:$0xf]  ;;  %v338_v20 = vld [vmem:[%s4030_s17 + $0x8] sm:$0xf]  ;;  %3392 = vmatprep.subr.bf16.mxu1 %v3768_v42  ;;  %s4613_s23 = scalar_lea.hbm %s4664_s9, %s3183_s28 }
  0x19   : > { %v343_v14 = vunpack.c.l.u8.bf16 %v336_v11  ;;  %v344_v15 = vunpack.c.l.u8.bf16 %v337_v12  ;;  %v339_v21 = vld [vmem:[%s4030_s17 + $0xc] sm:$0xf]  ;;  %v345_v23 = vunpack.c.l.u8.bf16 %v338_v20  ;;  %v340_v26 = vld [vmem:[%s4030_s17 + $0x10] sm:$0xf]  ;;  %v341_v27 = vld [vmem:[%s4030_s17 + $0x14] sm:$0xf] }
  0x1a   : > { %v346_v24 = vunpack.c.l.u8.bf16 %v339_v21  ;;  %v347_v29 = vunpack.c.l.u8.bf16 %v340_v26  ;;  %v348_v30 = vunpack.c.l.u8.bf16 %v341_v27  ;;  %v342_v32 = vld [vmem:[%s4030_s17 + $0x18] sm:$0xf]  ;;  %s2960_s22 = scalar_lea.sflag [#allocation4], %s326_s27  ;;  %s3834_s13 = scalar_lea.vmem %s4615_s14, 16 }
  0x1b   : > { %3194 = vmatpush3.bf16.msra.mxu0 %v3755_v7  ;;  %v3035_v17 = vcombine.high %v343_v14, %v344_v15  ;;  %v3034_v25 = vcombine.low %v343_v14, %v344_v15  ;;  %v349_v34 = vunpack.c.l.u8.bf16 %v342_v32  ;;  %p3835_p11 = scmp.ne.s32.totalorder %s4615_s14, %s3834_s13  ;;  %s3900_s24 = smov [#allocation3]  }
  0x1c   : > { %3195 = vmatprep.subr.bf16.mxu0 %v3756_v8  ;;  %v3037_v28 = vcombine.high %v345_v23, %v346_v24  ;;  %v3036_v31 = vcombine.low %v345_v23, %v346_v24  ;;  %v3039_v33 = vcombine.high %v347_v29, %v348_v30  ;;  %v3038_v35 = vcombine.low %v347_v29, %v348_v30  ;;  %v3769_v24 = vld [vmem:[%s4658_s3 + $0x58] sm:$0xff]   ;;  %v3771_v30 = vld [vmem:[%s4658_s3 + $0x8] sm:$0xff]   ;;  %s3838_s26 = sshll.u32 %s3900_s24, 4  ;;  %s3839_s26 = int_to_ptr.vmem [resolvable:$false] %s3838_s26 }
  0x1d   : > { %554 = vmatprep.mubr.bf16.mxu0 %v3035_v17  ;;  %v3041_v36 = vcombine.high %v349_v34, %v349_v34  ;;  %v3040_v37 = vcombine.low %v349_v34, %v349_v34  ;;  %p3836_p12 = pnand %p3835_p11, %p3989_p5  ;;  %s3840_s25 = scalar_lea.vmem %s3839_s26, 32 }
  0x1e   : > { %p3841_p0 = scmp.lt.s32.totalorder %s4615_s14, %s3839_s26  ;;  %p3842_p1 = scmp.lt.s32.totalorder %s3840_s25, %s3834_s13 }
  0x1f   : > { %3196 = vmatpush3.bf16.msra.mxu0 %v3757_v9  ;;  %p3837_p13 = pneg %p3836_p12 }
  0x20   : > { %3197 = vmatprep.subr.bf16.mxu0 %v3758_v10  ;;  %p3843_p2 = por %p3842_p1, %p3841_p0 }
  0x22   : > { %p3844_p3 = pnand %p3843_p2, %p3837_p13 }
  0x23   : > { %3198 = vmatpush3.bf16.msra.mxu0 %v3759_v13 }
  0x24   : > { %3199 = vmatprep.subr.bf16.mxu0 %v3760_v16 }
  0x27   : > { %3200 = vmatpush3.bf16.msra.mxu0 %v3761_v18 }
  0x28   : > { %3201 = vmatprep.subr.bf16.mxu0 %v3762_v19 }
  0x2b   : > { %3202 = vmatpush3.bf16.msra.mxu0 %v3763_v22 }
  0x2c   : > { %3352 = vmatprep.subr.bf16.mxu0 %v3765_v39 }
  0x2e   : > { %555 = vmatmul.mubr.bf16.vlgmr.msra.gmra.mrb[0].mxu0 %v3034_v25 }
  0x2f   : > { %562 = vmatprep.mubr.bf16.mxu0 %v3037_v28  ;;  %3353 = vmatpush3.bf16.msra.mxu0 %v3765_v39 }
  0x30   : > { %3354 = vmatprep.subr.bf16.mxu0 %v3767_v41 }
  0x33   : > { %3355 = vmatpush3.bf16.msra.mxu0 %v3767_v41 }
  0x34   : > { %3360 = vmatprep.subr.bf16.mxu0 %v4078_v43 }
  0x36   : > { %563 = vmatmul.mubr.bf16.gmra.mrb[4].mxu0 %v3036_v31 }
  0x37   : > { %570 = vmatprep.mubr.bf16.mxu0 %v3039_v33 }
  0x3e   : > { %571 = vmatmul.mubr.bf16.gmra.mrb[8].mxu0 %v3038_v35 }
  0x3f   : > { %578 = vmatprep.mubr.bf16.mxu0 %v3041_v36  ;;  %v3772_v36 = vld [vmem:[%s4658_s3 + $0x60] sm:$0xff]  }
  0x46   : > { %579 = vmatmul.mubr.bf16.gmra.mrb[12].mxu0 %v3040_v37 }
 0x101   : > { %v3203_v44 = vpop.f32.mrb[0].mxu0 }
 0x102   : > { %v3204_v46 = vpop.f32.mrb[1].mxu0 }
 0x103   : > { %v3205_v47 = vadd.f32 %v3204_v46, %v3203_v44  ;;  %v3206_v48 = vpop.f32.mrb[2].mxu0 }
 0x104   : > { %v3207_v49 = vpop.f32.mrb[3].mxu0 }
 0x105   : > { %v557_v50 = vadd.f32 %v3205_v47, %v4084_v45  ;;  %v3208_v51 = vadd.f32 %v3207_v49, %v3206_v48 }
 0x107   : > { %v560_v52 = vadd.f32 %v3208_v51, %v4084_v45  ;;  %v586_v53 = vmax.f32 %v557_v50, 0.0 }
 0x109   : > { %v587_v54 = vmax.f32 %v560_v52, 0.0  ;;  %v3209_v55 = vpop.f32.mrb[4].mxu0 }
 0x10a   : > { %v3210_v56 = vpop.f32.mrb[5].mxu0 }
 0x10b   : > { %v4088_v57 = vpack.c.bf16 %v587_v54, %v586_v53  ;;  %v3211_v58 = vadd.f32 %v3210_v56, %v3209_v55  ;;  %v3212_v59 = vpop.f32.mrb[6].mxu0  ;;  %v3773_v55 = vld [vmem:[%s4658_s3 + $0x68] sm:$0xff]  }
 0x10c   : > { %v3213_v60 = vpop.f32.mrb[7].mxu0 }
 0x10d   : > { %v565_v61 = vadd.f32 %v3211_v58, %v4084_v45  ;;  %v3214_v62 = vadd.f32 %v3213_v60, %v3212_v59  ;;  %v4092_v63 = vshll.u32 %v4088_v57, 16  ;;  %v4096_v5 = vshrl.u32 %v4088_v57, 16 }
 0x10e   : > { %v917_v11 = vrot.slane %v4088_v57, 2  ;;  %v759_v47 = vrot.slane %v4088_v57, 1 }
 0x10f   : > { %v568_v0 = vadd.f32 %v3214_v62, %v4084_v45  ;;  %v588_v1 = vmax.f32 %v565_v61, 0.0  ;;  %v611_v6 = vrot.slane %v4092_v63, 1  ;;  %v994_v18 = vrot.slane %v4096_v5, 3 }
 0x110   : > { %v995_v19 = vrot.slane %v4092_v63, 4  ;;  %v1484_v49 = vrot.slane %v4096_v5, 7 }
 0x111   : > { %v589_v2 = vmax.f32 %v568_v0, 0.0  ;;  %v3215_v3 = vpop.f32.mrb[8].mxu0  ;;  %v612_v16 = vor.u32 %v611_v6, %v4096_v5 }
 0x112   : > { %v3216_v4 = vpop.f32.mrb[9].mxu0  ;;  %v996_v32 = vor.u32 %v995_v19, %v994_v18  ;;  %v1152_v19 = vrot.slane %v4096_v5, 4 }
 0x113   : > { %v4099_v7 = vpack.c.bf16 %v589_v2, %v588_v1  ;;  %v3217_v8 = vadd.f32 %v3216_v4, %v3215_v3  ;;  %v3218_v9 = vpop.f32.mrb[10].mxu0  ;;  %v3775_v3 = vld [vmem:[%s4658_s3 + $0x28] sm:$0xff]  }
 0x114   : > { %v3219_v10 = vpop.f32.mrb[11].mxu0 }
 0x115   : > { %v573_v12 = vadd.f32 %v3217_v8, %v4084_v45  ;;  %v3220_v13 = vadd.f32 %v3219_v10, %v3218_v9  ;;  %v918_v14 = vrot.slane %v4099_v7, 2  ;;  %v4105_v15 = vshll.u32 %v4099_v7, 16 }
 0x116   : > { %v4109_v17 = vshrl.u32 %v4099_v7, 16  ;;  %v4147_v44 = vrot.slane %v4099_v7, 4  ;;  %v4162_v52 = vrot.slane %v4099_v7, 1 }
 0x117   : > { %v590_v20 = vmax.f32 %v573_v12, 0.0  ;;  %v576_v21 = vadd.f32 %v3220_v13, %v4084_v45  ;;  %v919_v22 = vsel %vm916_vm1, %v917_v11, %v918_v14  ;;  %v616_v23 = vrot.slane %v4105_v15, 1  ;;  %v3776_v12 = vld [vmem:[%s4658_s3 + $0x70] sm:$0xff]  }
 0x118   : > { %3388 = vmatprep.mubr.msk.bf16.mxu1 %vm633_vm0, %v919_v22  ;;  %v997_v25 = vrot.slane %v4109_v17, 3  ;;  %v998_v26 = vrot.slane %v4105_v15, 4  ;;  %v1485_v50 = vrot.slane %v4109_v17, 7  ;;  %v1155_v56 = vrot.slane %v4109_v17, 4 }
 0x119   : > { %v591_v27 = vmax.f32 %v576_v21, 0.0  ;;  %3389 = vmatmul.mubr.msk.bf16.vlgmr.msra.gmra.mrb[0].mxu1 %vm633_vm0, %v918_v14  ;;  %v617_v28 = vsel %vm605_vm2, %v612_v16, %v616_v23  ;;  %v620_v29 = vor.u32 %v4109_v17, %v616_v23  ;;  %v3221_v31 = vpop.f32.mrb[12].mxu0  ;;  %v1785_v59 = vrot.slane %v4109_v17, 2  ;;  %v3778_v23 = vld [vmem:[%s4658_s3 + $0x30] sm:$0xff]  }
 0x11a   : > { %3393 = vmatpush3.bf16.msra.mxu1 %v3768_v42  ;;  %3356 = vmatprep.mubr.msk.bf16.mxu0 %vm633_vm0, %v617_v28  ;;  %v4128_v33 = vor.u32 %v998_v26, %v997_v25  ;;  %v3222_v34 = vpop.f32.mrb[13].mxu0  ;;  %v3774_v42 = vld [vmem:[%s4658_s3 + $0x20] sm:$0xff]   ;;  %v1486_v58 = vor.u32 %v1485_v50, %v4105_v15  ;;  %v1786_v60 = vrot.slane %v4105_v15, 3  ;;  %v1156_v61 = vrot.slane %v4105_v15, 5 }
 0x11b   : > { %v4130_v35 = vpack.c.bf16 %v591_v27, %v590_v20  ;;  %3357 = vmatmul.mubr.msk.bf16.vlgmr.msra.gmra.mrb[16].mxu0 %vm633_vm0, %v620_v29  ;;  %3394 = vmatprep.subr.bf16.mxu1 %v3769_v24  ;;  %v3223_v37 = vadd.f32 %v3222_v34, %v3221_v31  ;;  %v3224_v38 = vpop.f32.mrb[14].mxu0  ;;  %v761_v9 = vsel %vm758_vm5, %v759_v47, %v4162_v52  ;;  %v1153_v20 = vrot.slane %v4092_v63, 5 }
 0x11c   : > { %3364 = vmatprep.mubr.msk.bf16.mxu0 %vm633_vm0, %v4088_v57  ;;  %v1000_v39 = vsel %vm993_vm3, %v996_v32, %v4128_v33  ;;  %3361 = vmatpush3.bf16.msra.mxu0 %v4078_v43  ;;  %v3225_v40 = vpop.f32.mrb[15].mxu0  ;;  %v1075_v43 = vrot.slane %v4088_v57, 4  ;;  %v4196_v4 = vsel %vm1483_vm6, %v1484_v49, %v1486_v58  ;;  %v1787_v6 = vor.u32 %v1786_v60, %v1785_v59 }
 0x11d   : > { %3396 = vmatprep.mubr.msk.bf16.mxu1 %vm633_vm0, %v1000_v39  ;;  %3362 = vmatprep.subr.bf16.mxu0 %v3771_v30  ;;  %v581_v41 = vadd.f32 %v3223_v37, %v4084_v45  ;;  %v4150_v46 = vshll.u32 %v4130_v35, 16  ;;  %v4155_v48 = vshrl.u32 %v4130_v35, 16  ;;  %v1709_v54 = vrot.slane %v4130_v35, 1 }
 0x11e   : > { %3395 = vmatpush3.bf16.msra.mxu1 %v3769_v24  ;;  %v1077_v51 = vsel %vm1074_vm4, %v1075_v43, %v4147_v44  ;;  %v2019_v14 = vrot.slane %v4130_v35, 4  ;;  %v1157_v21 = vor.u32 %v1156_v61, %v1155_v56  ;;  %v839_v28 = vrot.slane %v4109_v17, 1  ;;  %v3777_v56 = vld [vmem:[%s4658_s3 + $0x78] sm:$0xff]  }
 0x11f   : > { %3400 = vmatprep.subr.bf16.mxu1 %v3772_v36  ;;  %v592_v45 = vmax.f32 %v581_v41, 0.0  ;;  %v1633_v53 = vrot.slane %v4150_v46, 1  ;;  %v1162_v62 = vrot.slane %v4150_v46, 5  ;;  %v4186_v1 = vsel %vm758_vm5, %v4162_v52, %v1709_v54 }
 0x120   : > { %3363 = vmatpush3.bf16.msra.mxu0 %v3771_v30  ;;  %v1788_v8 = vrot.slane %v4155_v48, 2  ;;  %v1789_v10 = vrot.slane %v4150_v46, 3  ;;  %v1942_v11 = vrot.slane %v4155_v48, 3  ;;  %v1943_v13 = vrot.slane %v4150_v46, 4 }
 0x121   : > { %3368 = vmatprep.subr.bf16.mxu0 %v3774_v42  ;;  %v4180_v0 = vsel %vm605_vm2, %v620_v29, %v1633_v53  ;;  %v4190_v2 = vpack.c.bf16 %v592_v45, %v592_v45  ;;  %v2094_v16 = vrot.slane %v4155_v48, 4  ;;  %v4229_v25 = vsel %vm1074_vm4, %v4147_v44, %v2019_v14 }
 0x122   : > { %v4218_v22 = vor.u32 %v1789_v10, %v1788_v8  ;;  %v4223_v24 = vor.u32 %v1943_v13, %v1942_v11  ;;  %v840_v29 = vrot.slane %v4105_v15, 2  ;;  %v2256_v31 = vrot.slane %v4109_v17, 6  ;;  %v3779_v8 = vld [vmem:[%s4658_s3 + $0x38] sm:$0xff]  }
 0x123   : > { %v4213_v18 = vshll.u32 %v4190_v2, 16  ;;  %v2095_v26 = vor.u32 %v2094_v16, %v1162_v62  ;;  %v2257_v37 = vrot.slane %v4105_v15, 7  ;;  %v836_v38 = vrot.slane %v4096_v5, 1 }
 0x124   : > { %v4238_v30 = vsel %vm1784_vm7, %v1787_v6, %v4218_v22  ;;  %v4244_v32 = vsel %vm993_vm3, %v4128_v33, %v4223_v24  ;;  %v2259_v39 = vrot.slane %v4155_v48, 6  ;;  %v2260_v40 = vrot.slane %v4150_v46, 7 }
 0x125   : > { %3397 = vmatmul.mubr.msk.bf16.vlgmr.msra.gmra.mrb[0].mxu1 %vm633_vm0, %v4128_v33  ;;  %v2100_v27 = vrot.slane %v4213_v18, 5  ;;  %v4247_v34 = vsel %vm1151_vm8, %v1157_v21, %v2095_v26  ;;  %v2263_v41 = vshrl.u32 %v4190_v2, 16  ;;  %v837_v33 = vrot.slane %v4092_v63, 2 }
 0x126   : > { %3401 = vmatpush3.bf16.msra.mxu1 %v3772_v36  ;;  %3404 = vmatprep.mubr.msk.bf16.mxu1 %vm633_vm0, %v1077_v51  ;;  %v2258_v43 = vor.u32 %v2257_v37, %v2256_v31  ;;  %v2342_v47 = vrot.slane %v4190_v2, 7  ;;  %v4260_v45 = vor.u32 %v2260_v40, %v2259_v39  ;;  %v1154_v51 = vor.u32 %v1153_v20, %v1152_v19  ;;  %v3782_v19 = vld [vmem:[%s4658_s3 + $0x90] sm:$0xff]  }
 0x127   : > { %3365 = vmatmul.mubr.msk.bf16.vlgmr.msra.gmra.mrb[16].mxu0 %vm633_vm0, %v4099_v7  ;;  %3402 = vmatprep.subr.bf16.mxu1 %v3773_v55  ;;  %v4250_v36 = vsel %vm1151_vm8, %v2095_v26, %v2100_v27  ;;  %v2414_v49 = vrot.slane %v2263_v41, 7  ;;  %v1488_v59 = vrot.slane %v4155_v48, 7  ;;  %v838_v6 = vor.u32 %v837_v33, %v836_v38  ;;  %v3785_v33 = vld [vmem:[%s4658_s3 + $0xa8] sm:$0xff]  }
 0x128   : > { %3372 = vmatprep.mubr.msk.bf16.mxu0 %vm633_vm0, %v761_v9  ;;  %3369 = vmatpush3.bf16.msra.mxu0 %v3774_v42  ;;  %v1408_v42 = vrot.slane %v4130_v35, 7  ;;  %v4275_v60 = vsel %vm2255_vm9, %v2258_v43, %v4260_v45  ;;  %v1240_v11 = vrot.slane %v4099_v7, 5  ;;  %v1163_v13 = vsel %vm1151_vm8, %v1157_v21, %v1162_v62 }
 0x129   : > { %3370 = vmatprep.subr.bf16.mxu0 %v3775_v3  ;;  %v2415_v61 = vor.u32 %v2414_v49, %v4213_v18  ;;  %v1321_v20 = vrot.slane %v4109_v17, 5  ;;  %v1318_v62 = vrot.slane %v4096_v5, 5  ;;  %v1242_v26 = vrot.slane %v4130_v35, 5  ;;  %v3786_v49 = vld [vmem:[%s4658_s3 + $0xb0] sm:$0xff]   ;;  %v3791_v17 = vld [vmem:[%s4658_s3 + $0xd8] sm:$0xff]  }
 0x12a   : > { %3403 = vmatpush3.bf16.msra.mxu1 %v3773_v55  ;;  %v841_v55 = vor.u32 %v840_v29, %v839_v28  ;;  %v4270_v58 = vsel %vm1404_vm10, %v1408_v42, %v2342_v47  ;;  %v3783_v29 = vld [vmem:[%s4658_s3 + $0x98] sm:$0xff]   ;;  %v1327_v5 = vrot.slane %v4155_v48, 5  ;;  %v1328_v37 = vrot.slane %v4150_v46, 6 }
 0x12b   : > { %3408 = vmatprep.subr.bf16.mxu1 %v3776_v12  ;;  %v4288_v9 = vsel %vm1483_vm6, %v1488_v59, %v2415_v61  ;;  %v1243_v31 = vsel %vm1238_vm12, %v1240_v11, %v1242_v26  ;;  %v1406_v39 = vrot.slane %v4099_v7, 7  ;;  %v1405_v40 = vrot.slane %v4088_v57, 7 }
 0x12c   : > { %3371 = vmatpush3.bf16.msra.mxu0 %v3775_v3  ;;  %v1158_v3 = vsel %vm1151_vm8, %v1154_v51, %v1157_v21  ;;  %v842_v10 = vsel %vm835_vm11, %v838_v6, %v841_v55  ;;  %v1319_v21 = vrot.slane %v4092_v63, 6  ;;  %v3784_v63 = vld [vmem:[%s4658_s3 + $0xa0] sm:$0xff]   ;;  %v1329_v38 = vor.u32 %v1328_v37, %v1327_v5  ;;  %v3798_v6 = vld [vmem:[%s4658_s3 + $0x110] sm:$0xff]  }
 0x12d   : > { %3376 = vmatprep.subr.bf16.mxu0 %v3778_v23  ;;  %v1407_v47 = vsel %vm1404_vm10, %v1405_v40, %v1406_v39  ;;  %v4346_v51 = vsel %vm1404_vm10, %v1406_v39, %v1408_v42  ;;  %v3789_v42 = vld [vmem:[%s4658_s3 + $0xc8] sm:$0xff]   ;;  %vm3899_vm1 = vmmov 0   ;;  %v2556_v40 = vld [vmem:[%s4659_s4] sm:$0x1] }
 0x12e   : > { %v1320_v28 = vor.u32 %v1319_v21, %v1318_v62  ;;  %v3813_v62 = vld [vmem:[%s4658_s3 + $0x188] sm:$0xff]  }
 0x131   : > { %3405 = vmatmul.mubr.msk.bf16.vlgmr.msra.gmra.mrb[0].mxu1 %vm633_vm0, %v4147_v44  ;;  %v3780_v44 = vld [vmem:[%s4658_s3 + $0x80] sm:$0xff]  }
 0x132   : > { %3409 = vmatpush3.bf16.msra.mxu1 %v3776_v12  ;;  %3412 = vmatprep.mubr.msk.bf16.mxu1 %vm633_vm0, %v1158_v3  ;;  %v1239_v12 = vrot.slane %v4088_v57, 5  ;;  %v3787_v57 = vld [vmem:[%s4658_s3 + $0xb8] sm:$0xff]   ;;  %v3793_v3 = vld [vmem:[%s4658_s3 + $0xe8] sm:$0xff]  }
 0x133   : > { %3373 = vmatmul.mubr.msk.bf16.vlgmr.msra.gmra.mrb[16].mxu0 %vm633_vm0, %v4162_v52  ;;  %3410 = vmatprep.subr.bf16.mxu1 %v3777_v56  ;;  %v3781_v52 = vld [vmem:[%s4658_s3 + $0x88] sm:$0xff]  }
 0x134   : > { %3380 = vmatprep.mubr.msk.bf16.mxu0 %vm633_vm0, %v842_v10  ;;  %3377 = vmatpush3.bf16.msra.mxu0 %v3778_v23  ;;  %v1241_v16 = vsel %vm1238_vm12, %v1239_v12, %v1240_v11  ;;  %v1322_v23 = vrot.slane %v4105_v15, 6  ;;  %v3801_v10 = vld [vmem:[%s4658_s3 + $0x128] sm:$0xff]   ;;  %v2177_v11 = vrot.slane %v4099_v7, 6  ;;  %v3806_v12 = vld [vmem:[%s4658_s3 + $0x150] sm:$0xff]  }
 0x135   : > { %3378 = vmatprep.subr.bf16.mxu0 %v3779_v8 }
 0x136   : > { %3411 = vmatpush3.bf16.msra.mxu1 %v3777_v56  ;;  %v1323_v27 = vor.u32 %v1322_v23, %v1321_v20  ;;  %v1489_v56 = vor.u32 %v1488_v59, %v4150_v46  ;;  %v1635_v59 = vor.u32 %v1633_v53, %v4155_v48  ;;  %v3795_v46 = vld [vmem:[%s4658_s3 + $0xf8] sm:$0xff]   ;;  %v3796_v48 = vld [vmem:[%s4658_s3 + $0x100] sm:$0xff]   ;;  %v1867_v53 = vrot.slane %v4130_v35, 3  ;;  %v3809_v23 = vld [vmem:[%s4658_s3 + $0x168] sm:$0xff]  }
 0x137   : > { %3416 = vmatprep.subr.bf16.mxu1 %v3780_v44 }
 0x138   : > { %3379 = vmatpush3.bf16.msra.mxu0 %v3779_v8  ;;  %v1324_v15 = vsel %vm1317_vm13, %v1320_v28, %v1323_v27  ;;  %v1330_v43 = vsel %vm1317_vm13, %v1323_v27, %v1329_v38  ;;  %v4364_v61 = vsel %vm1483_vm6, %v1485_v50, %v1489_v56  ;;  %v3792_v50 = vld [vmem:[%s4658_s3 + $0xe0] sm:$0xff]   ;;  %v3799_v8 = vld [vmem:[%s4658_s3 + $0x118] sm:$0xff]   ;;  %v3820_v56 = vld [vmem:[%s4660_s5 + $0x10] sm:$0xff]  }
 0x139   : > { %v3814_v28 = vld [vmem:[%s4660_s5 + $0x20] sm:$0xff]  }
 0x13d   : > { %3413 = vmatmul.mubr.msk.bf16.vlgmr.msra.gmra.mrb[0].mxu1 %vm633_vm0, %v1163_v13 }
 0x13e   : > { %3417 = vmatpush3.bf16.msra.mxu1 %v3780_v44  ;;  %3420 = vmatprep.mubr.msk.bf16.mxu1 %vm633_vm0, %v1241_v16  ;;  %v3803_v44 = vld [vmem:[%s4658_s3 + $0x138] sm:$0xff]   ;;  %v2265_v16 = vrot.slane %v2263_v41, 6 }
 0x13f   : > { %3381 = vmatmul.mubr.msk.bf16.vlgmr.msra.gmra.mrb[16].mxu0 %vm633_vm0, %v841_v55  ;;  %3418 = vmatprep.subr.bf16.mxu1 %v3781_v52  ;;  %v3788_v55 = vld [vmem:[%s4658_s3 + $0xc0] sm:$0xff]   ;;  %v3811_v41 = vld [vmem:[%s4658_s3 + $0x178] sm:$0xff]  }
 0x142   : > { %3419 = vmatpush3.bf16.msra.mxu1 %v3781_v52  ;;  %v3807_v52 = vld [vmem:[%s4658_s3 + $0x158] sm:$0xff]  }
 0x143   : > { %3424 = vmatprep.subr.bf16.mxu1 %v3782_v19 }
 0x149   : > { %3421 = vmatmul.mubr.msk.bf16.vlgmr.msra.gmra.mrb[0].mxu1 %vm633_vm0, %v1243_v31 }
 0x14a   : > { %3425 = vmatpush3.bf16.msra.mxu1 %v3782_v19  ;;  %3428 = vmatprep.mubr.msk.bf16.mxu1 %vm633_vm0, %v1324_v15  ;;  %v2266_v19 = vrot.slane %v4213_v18, 7  ;;  %v3810_v18 = vld [vmem:[%s4658_s3 + $0x170] sm:$0xff]  }
 0x14b   : > { %3426 = vmatprep.subr.bf16.mxu1 %v3783_v29 }
 0x14c   : > { %v2267_v20 = vor.u32 %v2266_v19, %v2265_v16 }
 0x14e   : > { %3427 = vmatpush3.bf16.msra.mxu1 %v3783_v29  ;;  %v3898_v29 = vmov 0.0  }
 0x14f   : > { %3432 = vmatprep.subr.bf16.mxu1 %v3784_v63  ;;  %3552 = vmatprep.subr.bf16.mxu0 %v3898_v29 }
 0x150   : > { %3553 = vmatpush3.bf16.msra.mxu0 %v3814_v28  ;;  %3560 = vmatprep.mubr.msk.bf16.mxu0 %vm3899_vm1, %v3898_v29 }
 0x151   : > { %3554 = vmatprep.subr.bf16.mxu0 %v3898_v29 }
 0x155   : > { %3429 = vmatmul.mubr.msk.bf16.vlgmr.msra.gmra.mrb[0].mxu1 %vm633_vm0, %v1330_v43 }
 0x156   : > { %3433 = vmatpush3.bf16.msra.mxu1 %v3784_v63  ;;  %3436 = vmatprep.mubr.msk.bf16.mxu1 %vm633_vm0, %v1407_v47 }
 0x157   : > { %3434 = vmatprep.subr.bf16.mxu1 %v3785_v33 }
 0x15a   : > { %3435 = vmatpush3.bf16.msra.mxu1 %v3785_v33 }
 0x15b   : > { %3440 = vmatprep.subr.bf16.mxu1 %v3786_v49 }
 0x161   : > { %3437 = vmatmul.mubr.msk.bf16.vlgmr.msra.gmra.mrb[0].mxu1 %vm633_vm0, %v4346_v51 }
 0x162   : > { %3441 = vmatpush3.bf16.msra.mxu1 %v3786_v49  ;;  %3444 = vmatprep.mubr.msk.bf16.mxu1 %vm633_vm0, %v4196_v4  ;;  %v3790_v4 = vld [vmem:[%s4658_s3 + $0xd0] sm:$0xff]   ;;  %v3818_v49 = vld [vmem:[%s4660_s5] sm:$0xff]  }
 0x163   : > { %3442 = vmatprep.subr.bf16.mxu1 %v3787_v57 }
 0x166   : > { %3443 = vmatpush3.bf16.msra.mxu1 %v3787_v57 }
 0x167   : > { %3448 = vmatprep.subr.bf16.mxu1 %v3788_v55 }
 0x16d   : > { %3445 = vmatmul.mubr.msk.bf16.vlgmr.msra.gmra.mrb[0].mxu1 %vm633_vm0, %v4364_v61 }
 0x16e   : > { %3449 = vmatpush3.bf16.msra.mxu1 %v3788_v55  ;;  %3452 = vmatprep.mubr.msk.bf16.mxu1 %vm633_vm0, %v4099_v7 }
 0x16f   : > { %3450 = vmatprep.subr.bf16.mxu1 %v3789_v42 }
 0x172   : > { %3451 = vmatpush3.bf16.msra.mxu1 %v3789_v42 }
 0x173   : > { %3456 = vmatprep.subr.bf16.mxu1 %v3790_v4 }
 0x179   : > { %3453 = vmatmul.mubr.msk.bf16.vlgmr.msra.gmra.mrb[0].mxu1 %vm633_vm0, %v4130_v35 }
 0x17a   : > { %3457 = vmatpush3.bf16.msra.mxu1 %v3790_v4  ;;  %3460 = vmatprep.mubr.msk.bf16.mxu1 %vm633_vm0, %v4180_v0  ;;  %v3794_v0 = vld [vmem:[%s4658_s3 + $0xf0] sm:$0xff]  }
 0x17b   : > { %3458 = vmatprep.subr.bf16.mxu1 %v3791_v17 }
 0x17e   : > { %3459 = vmatpush3.bf16.msra.mxu1 %v3791_v17  ;;  %v3822_v17 = vld [vmem:[%s4660_s5 + $0x40] sm:$0xff]  }
 0x17f   : > { %3464 = vmatprep.subr.bf16.mxu1 %v3792_v50 }
 0x185   : > { %3461 = vmatmul.mubr.msk.bf16.vlgmr.msra.gmra.mrb[0].mxu1 %vm633_vm0, %v1635_v59  ;;  %v3823_v59 = vld [vmem:[%s4660_s5 + $0x48] sm:$0xff]  }
 0x186   : > { %3465 = vmatpush3.bf16.msra.mxu1 %v3792_v50  ;;  %3468 = vmatprep.mubr.msk.bf16.mxu1 %vm633_vm0, %v4186_v1  ;;  %v1866_v1 = vrot.slane %v4099_v7, 3  ;;  %v2180_v7 = vrot.slane %v4190_v2, 6 }
 0x187   : > { %3466 = vmatprep.subr.bf16.mxu1 %v3793_v3 }
 0x18a   : > { %3467 = vmatpush3.bf16.msra.mxu1 %v3793_v3 }
 0x18b   : > { %3472 = vmatprep.subr.bf16.mxu1 %v3794_v0 }
 0x191   : > { %3469 = vmatmul.mubr.msk.bf16.vlgmr.msra.gmra.mrb[0].mxu1 %vm633_vm0, %v1709_v54  ;;  %v3797_v54 = vld [vmem:[%s4658_s3 + $0x108] sm:$0xff]  }
 0x192   : > { %3473 = vmatpush3.bf16.msra.mxu1 %v3794_v0  ;;  %3476 = vmatprep.mubr.msk.bf16.mxu1 %vm633_vm0, %v4238_v30  ;;  %v1868_v30 = vsel %vm1865_vm14, %v1866_v1, %v1867_v53  ;;  %v3824_v0 = vld [vmem:[%s4660_s5 + $0x50] sm:$0xff]   ;;  %v3826_v1 = vld [vmem:[%s4660_s5 + $0x60] sm:$0xff]  }
 0x193   : > { %3474 = vmatprep.subr.bf16.mxu1 %v3795_v46 }
 0x196   : > { %3475 = vmatpush3.bf16.msra.mxu1 %v3795_v46 }
 0x197   : > { %3480 = vmatprep.subr.bf16.mxu1 %v3796_v48 }
 0x19d   : > { %3477 = vmatmul.mubr.msk.bf16.vlgmr.msra.gmra.mrb[0].mxu1 %vm633_vm0, %v4218_v22  ;;  %v3800_v22 = vld [vmem:[%s4658_s3 + $0x120] sm:$0xff]  }
 0x19e   : > { %3481 = vmatpush3.bf16.msra.mxu1 %v3796_v48  ;;  %3484 = vmatprep.mubr.msk.bf16.mxu1 %vm633_vm0, %v1868_v30  ;;  %v3825_v48 = vld [vmem:[%s4660_s5 + $0x58] sm:$0xff]   ;;  %v3827_v30 = vld [vmem:[%s4660_s5 + $0x68] sm:$0xff]  }
 0x19f   : > { %3482 = vmatprep.subr.bf16.mxu1 %v3797_v54 }
 0x1a2   : > { %3483 = vmatpush3.bf16.msra.mxu1 %v3797_v54 }
 0x1a3   : > { %3488 = vmatprep.subr.bf16.mxu1 %v3798_v6 }
 0x1a9   : > { %3485 = vmatmul.mubr.msk.bf16.vlgmr.msra.gmra.mrb[0].mxu1 %vm633_vm0, %v1867_v53 }
 0x1aa   : > { %3489 = vmatpush3.bf16.msra.mxu1 %v3798_v6  ;;  %3492 = vmatprep.mubr.msk.bf16.mxu1 %vm633_vm0, %v4244_v32  ;;  %v3802_v32 = vld [vmem:[%s4658_s3 + $0x130] sm:$0xff]  }
 0x1ab   : > { %3490 = vmatprep.subr.bf16.mxu1 %v3799_v8 }
 0x1ae   : > { %3491 = vmatpush3.bf16.msra.mxu1 %v3799_v8  ;;  %v3828_v8 = vld [vmem:[%s4660_s5 + $0x70] sm:$0xff]  }
 0x1af   : > { %3496 = vmatprep.subr.bf16.mxu1 %v3800_v22 }
 0x1b5   : > { %3493 = vmatmul.mubr.msk.bf16.vlgmr.msra.gmra.mrb[0].mxu1 %vm633_vm0, %v4223_v24  ;;  %v3804_v24 = vld [vmem:[%s4658_s3 + $0x140] sm:$0xff]  }
 0x1b6   : > { %3497 = vmatpush3.bf16.msra.mxu1 %v3800_v22  ;;  %3500 = vmatprep.mubr.msk.bf16.mxu1 %vm633_vm0, %v4229_v25  ;;  %v2178_v25 = vrot.slane %v4130_v35, 6 }
 0x1b7   : > { %3498 = vmatprep.subr.bf16.mxu1 %v3801_v10 }
 0x1b8   : > { %v2181_v13 = vsel %vm2176_vm15, %v2178_v25, %v2180_v7 }
 0x1ba   : > { %3499 = vmatpush3.bf16.msra.mxu1 %v3801_v10  ;;  %v3829_v10 = vld [vmem:[%s4660_s5 + $0x78] sm:$0xff]  }
 0x1bb   : > { %3504 = vmatprep.subr.bf16.mxu1 %v3802_v32 }
 0x1c1   : > { %3501 = vmatmul.mubr.msk.bf16.vlgmr.msra.gmra.mrb[0].mxu1 %vm633_vm0, %v2019_v14  ;;  %v3805_v14 = vld [vmem:[%s4658_s3 + $0x148] sm:$0xff]  }
 0x1c2   : > { %3505 = vmatpush3.bf16.msra.mxu1 %v3802_v32  ;;  %3508 = vmatprep.mubr.msk.bf16.mxu1 %vm633_vm0, %v4247_v34  ;;  %v2179_v34 = vsel %vm2176_vm15, %v2177_v11, %v2178_v25  ;;  %v3831_v25 = vld [vmem:[%s4662_s7 + $0x8] sm:$0xff]   ;;  %v3832_v11 = vld [vmem:[%s4662_s7 + $0x10] sm:$0xff]  }
 0x1c3   : > { %3506 = vmatprep.subr.bf16.mxu1 %v3803_v44 }
 0x1c6   : > { %3507 = vmatpush3.bf16.msra.mxu1 %v3803_v44 }
 0x1c7   : > { %3512 = vmatprep.subr.bf16.mxu1 %v3804_v24 }
 0x1cd   : > { %3509 = vmatmul.mubr.msk.bf16.vlgmr.msra.gmra.mrb[0].mxu1 %vm633_vm0, %v4250_v36  ;;  %v3808_v36 = vld [vmem:[%s4658_s3 + $0x160] sm:$0xff]  }
 0x1ce   : > { %3513 = vmatpush3.bf16.msra.mxu1 %v3804_v24  ;;  %3516 = vmatprep.mubr.msk.bf16.mxu1 %vm633_vm0, %v2179_v34  ;;  %v3830_v24 = vld [vmem:[%s4662_s7] sm:$0xff]  }
 0x1cf   : > { %3514 = vmatprep.subr.bf16.mxu1 %v3805_v14 }
 0x1d2   : > { %3515 = vmatpush3.bf16.msra.mxu1 %v3805_v14  ;;  %v3833_v14 = vld [vmem:[%s4662_s7 + $0x18] sm:$0xff]  }
 0x1d3   : > { %3520 = vmatprep.subr.bf16.mxu1 %v3806_v12 }
 0x1d9   : > { %3517 = vmatmul.mubr.msk.bf16.vlgmr.msra.gmra.mrb[0].mxu1 %vm633_vm0, %v2181_v13 }
 0x1da   : > { %3521 = vmatpush3.bf16.msra.mxu1 %v3806_v12  ;;  %3524 = vmatprep.mubr.msk.bf16.mxu1 %vm633_vm0, %v4275_v60  ;;  %v2268_v60 = vsel %vm2255_vm9, %v4260_v45, %v2267_v20  ;;  %v3812_v45 = vld [vmem:[%s4658_s3 + $0x180] sm:$0xff]  }
 0x1db   : > { %3522 = vmatprep.subr.bf16.mxu1 %v3807_v52 }
 0x1de   : > { %3523 = vmatpush3.bf16.msra.mxu1 %v3807_v52 }
 0x1df   : > { %3528 = vmatprep.subr.bf16.mxu1 %v3808_v36 }
 0x1e5   : > { %3525 = vmatmul.mubr.msk.bf16.vlgmr.msra.gmra.mrb[0].mxu1 %vm633_vm0, %v2268_v60 }
 0x1e6   : > { %3529 = vmatpush3.bf16.msra.mxu1 %v3808_v36  ;;  %3532 = vmatprep.mubr.msk.bf16.mxu1 %vm633_vm0, %v4346_v51  ;;  %v3819_v51 = vld [vmem:[%s4660_s5 + $0x8] sm:$0xff]  }
 0x1e7   : > { %3530 = vmatprep.subr.bf16.mxu1 %v3809_v23 }
 0x1ea   : > { %3531 = vmatpush3.bf16.msra.mxu1 %v3809_v23 }
 0x1eb   : > { %3536 = vmatprep.subr.bf16.mxu1 %v3810_v18 }
 0x1f1   : > { %3533 = vmatmul.mubr.msk.bf16.vlgmr.msra.gmra.mrb[0].mxu1 %vm633_vm0, %v4270_v58 }
 0x1f2   : > { %3537 = vmatpush3.bf16.msra.mxu1 %v3810_v18  ;;  %3540 = vmatprep.mubr.msk.bf16.mxu1 %vm633_vm0, %v4364_v61  ;;  %v3821_v61 = vld [vmem:[%s4660_s5 + $0x18] sm:$0xff]  }
 0x1f3   : > { %3538 = vmatprep.subr.bf16.mxu1 %v3811_v41 }
 0x1f6   : > { %3539 = vmatpush3.bf16.msra.mxu1 %v3811_v41 }
 0x1f7   : > { %3544 = vmatprep.subr.bf16.mxu1 %v3812_v45 }
 0x1fd   : > { %3541 = vmatmul.mubr.msk.bf16.vlgmr.msra.gmra.mrb[0].mxu1 %vm633_vm0, %v4288_v9  ;;  %v3817_v9 = vld [vmem:[%s4660_s5 + $0x38] sm:$0xff]  }
 0x1fe   : > { %3545 = vmatpush3.bf16.msra.mxu1 %v3812_v45  ;;  %3548 = vmatprep.mubr.msk.bf16.mxu1 %vm633_vm0, %v4130_v35  ;;  %v3815_v35 = vld [vmem:[%s4660_s5 + $0x28] sm:$0xff]  }
 0x1ff   : > { %3546 = vmatprep.subr.bf16.mxu1 %v3813_v62  ;;  %3555 = vmatpush3.bf16.msra.mxu0 %v3815_v35 }
 0x200   : > { %3556 = vmatprep.subr.bf16.mxu0 %v3898_v29 }
 0x202   : > { %3547 = vmatpush3.bf16.msra.mxu1 %v3813_v62 }
 0x209   : > { %3549 = vmatmul.mubr.msk.bf16.vlgmr.msra.gmra.mrb[0].mxu1 %vm633_vm0, %v4190_v2  ;;  %v3816_v2 = vld [vmem:[%s4660_s5 + $0x30] sm:$0xff]   ;;  %vm2552_vm0 = vcmask 523264  }
 0x20a   : > { %3557 = vmatpush3.bf16.msra.mxu0 %v3816_v2 }
 0x20b   : > { %3558 = vmatprep.subr.bf16.mxu0 %v3898_v29 }
 0x20e   : > { %3559 = vmatpush3.bf16.msra.mxu0 %v3817_v9  ;;  %v2890_v9 = vld [vmem:[%s4663_s8] sm:$0x1] }
 0x20f   : > { %3564 = vmatprep.subr.bf16.mxu0 %v3898_v29 }
 0x212   : > { %v3382_v58 = vpop.f32.mrb[16].mxu0 }
 0x213   : > { %v895_v21 = vpop.f32.mrb[17].mxu0 }
 0x214   : > { %v3383_v26 = vpop.f32.mrb[18].mxu0 }
 0x215   : > { %v898_v27 = vpop.f32.mrb[19].mxu0 }
 0x2dc   : > { %v3550_v31 = vpop.f32.mrb[0].mxu1 }
 0x2dd   : > { %v3612_v15 = vadd.f32 %v3550_v31, %v3382_v58  ;;  %v2535_v63 = vpop.f32.mrb[1].mxu1  ;;  %v2878_v58 = vld [vmem:[%s4661_s6] sm:$0x1] }
 0x2de   : > { %v3613_v5 = vadd.f32 %v2535_v63, %v895_v21  ;;  %v3551_v37 = vpop.f32.mrb[2].mxu1 }
 0x2df   : > { %2555 = vst.msk [vmem:[#allocation2 + $0x10] sm:$0xff] %vm2552_vm0, %v3612_v15  ;;  %v2538_v38 = vpop.f32.mrb[3].mxu1 }
 0x2e0   : > { %2553 = vst.msk [vmem:[#allocation2] sm:$0xff] %vm2552_vm0, %v3613_v5  ;;  %v3614_v39 = vadd.f32 %v2538_v38, %v898_v27 }
 0x2e2   : > { %2554 = vst.msk [vmem:[#allocation2 + $0x8] sm:$0xff] %vm2552_vm0, %v3614_v39 }
 0x2e6   : > { %v2798_v6 = vld [vmem:[#allocation2 + $0x10] ss:$56 sm:$0x1] }
 0x2e7   : > { %v2570_v33 = vld [vmem:[#allocation2 + $0x2] ss:$56 sm:$0x1]  ;;  %v2557_v55 = vld [vmem:[#allocation2] ss:$56 sm:$0x1]  ;;  %v2799_v22 = vadd.f32 %v2798_v6, %v2556_v40 }
 0x2e8   : > { %v2571_v43 = vadd.f32 %v2570_v33, %v2556_v40  ;;  %v2558_v42 = vadd.f32 %v2557_v55, %v2556_v40 }
 0x2e9   : > { %v2717_v3 = vld [vmem:[#allocation2 + $0xe] ss:$56 sm:$0x1]  ;;  %v2800_v32 = vmax.f32 %v2799_v22, 0.0 }
 0x2ea   : > { %v2572_v47 = vmax.f32 %v2571_v43, 0.0  ;;  %v2559_v4 = vmax.f32 %v2558_v42, 0.0  ;;  %v2718_v46 = vadd.f32 %v2717_v3, %v2556_v40 }
 0x2eb   : > { %v2801_v44 = vpack.c.bf16 %v2800_v32, %v2800_v32 }
 0x2ec   : > { %v2573_v57 = vpack.c.bf16 %v2572_v47, %v2572_v47  ;;  %v2560_v50 = vpack.c.bf16 %v2559_v4, %v2559_v4  ;;  %v2719_v53 = vmax.f32 %v2718_v46, 0.0 }
 0x2ee   : > { %3561 = vmatmul.mubr.msk.bf16.vlgmr.msra.gmra.mrb[20].mxu0 %vm2552_vm0, %v2573_v57  ;;  %v2720_v54 = vpack.c.bf16 %v2719_v53, %v2719_v53 }
 0x2ef   : > { %3565 = vmatpush3.bf16.msra.mxu0 %v3818_v49  ;;  %3572 = vmatprep.mubr.msk.bf16.mxu0 %vm3899_vm1, %v3898_v29 }
 0x2f0   : > { %3566 = vmatprep.subr.bf16.mxu0 %v3898_v29 }
 0x2f3   : > { %3567 = vmatpush3.bf16.msra.mxu0 %v3819_v51 }
 0x2f4   : > { %3568 = vmatprep.subr.bf16.mxu0 %v3898_v29 }
 0x2f7   : > { %3569 = vmatpush3.bf16.msra.mxu0 %v3820_v56 }
 0x2f8   : > { %3570 = vmatprep.subr.bf16.mxu0 %v3898_v29 }
 0x2fb   : > { %3571 = vmatpush3.bf16.msra.mxu0 %v3821_v61 }
 0x2fc   : > { %3576 = vmatprep.subr.bf16.mxu0 %v3898_v29 }
 0x2fe   : > { %3573 = vmatmul.mubr.msk.bf16.vlgmr.msra.gmra.mrb[24].mxu0 %vm2552_vm0, %v2560_v50 }
 0x2ff   : > { %3577 = vmatpush3.bf16.msra.mxu0 %v3822_v17  ;;  %3584 = vmatprep.mubr.msk.bf16.mxu0 %vm3899_vm1, %v3898_v29 }
 0x300   : > { %3578 = vmatprep.subr.bf16.mxu0 %v3898_v29 }
 0x303   : > { %3579 = vmatpush3.bf16.msra.mxu0 %v3823_v59 }
 0x304   : > { %3580 = vmatprep.subr.bf16.mxu0 %v3898_v29 }
 0x307   : > { %3581 = vmatpush3.bf16.msra.mxu0 %v3824_v0 }
 0x308   : > { %3582 = vmatprep.subr.bf16.mxu0 %v3898_v29 }
 0x30b   : > { %3583 = vmatpush3.bf16.msra.mxu0 %v3825_v48 }
 0x30c   : > { %3588 = vmatprep.subr.bf16.mxu0 %v3898_v29 }
 0x30e   : > { %3585 = vmatmul.mubr.msk.bf16.vlgmr.msra.gmra.mrb[28].mxu0 %vm2552_vm0, %v2720_v54 }
 0x30f   : > { %3589 = vmatpush3.bf16.msra.mxu0 %v3826_v1  ;;  %3596 = vmatprep.mubr.msk.bf16.mxu0 %vm3899_vm1, %v3898_v29 }
 0x310   : > { %3590 = vmatprep.subr.bf16.mxu0 %v3898_v29 }
 0x313   : > { %3591 = vmatpush3.bf16.msra.mxu0 %v3827_v30 }
 0x314   : > { %3592 = vmatprep.subr.bf16.mxu0 %v3898_v29 }
 0x317   : > { %3593 = vmatpush3.bf16.msra.mxu0 %v3828_v8 }
 0x318   : > { %3594 = vmatprep.subr.bf16.mxu0 %v3898_v29 }
 0x31b   : > { %3595 = vmatpush3.bf16.msra.mxu0 %v3829_v10 }
 0x31c   : > { %3600 = vmatprep.subr.bf16.mxu0 %v3898_v29 }
 0x31e   : > { %3597 = vmatmul.mubr.msk.bf16.vlgmr.msra.gmra.mrb[32].mxu0 %vm2552_vm0, %v2801_v44 }
 0x31f   : > { %3608 = vmatprep.mubr.msk.bf16.mxu0 %vm3899_vm1, %v3898_v29  ;;  %3601 = vmatpush3.bf16.msra.mxu0 %v3830_v24 }
 0x320   : > { %3602 = vmatprep.subr.bf16.mxu0 %v3898_v29 }
 0x323   : > { %3603 = vmatpush3.bf16.msra.mxu0 %v3831_v25 }
 0x324   : > { %3604 = vmatprep.subr.bf16.mxu0 %v3898_v29 }
 0x327   : > { %3605 = vmatpush3.bf16.msra.mxu0 %v3832_v11 }
 0x328   : > { %3606 = vmatprep.subr.bf16.mxu0 %v3898_v29 }
 0x32b   : > { %3607 = vmatpush3.bf16.msra.mxu0 %v3833_v14 }
 0x3c1   : > { %v2643_v34 = vpop.f32.mrb[20].mxu0 }
 0x3c2   : > { %v3562_v12 = vpop.f32.mrb[21].mxu0 }
 0x3c3   : > { %v2646_v7 = vpop.f32.mrb[22].mxu0 }
 0x3c4   : > { %v3563_v52 = vpop.f32.mrb[23].mxu0 }
 0x3d1   : > { %v2710_v13 = vpop.f32.mrb[24].mxu0 }
 0x3d2   : > { %v2711_v36 = vadd.f32 %v2710_v13, %v2643_v34  ;;  %v3574_v16 = vpop.f32.mrb[25].mxu0 }
 0x3d3   : > { %v2713_v19 = vpop.f32.mrb[26].mxu0 }
 0x3d4   : > { %v3575_v20 = vpop.f32.mrb[27].mxu0 }
 0x3e1   : > { %v2790_v23 = vpop.f32.mrb[28].mxu0 }
 0x3e2   : > { %v2796_v60 = vadd.f32 %v2790_v23, %v2711_v36  ;;  %v3586_v18 = vpop.f32.mrb[29].mxu0 }
 0x3e3   : > { %v2793_v41 = vpop.f32.mrb[30].mxu0 }
 0x3e4   : > { %v3587_v45 = vpop.f32.mrb[31].mxu0 }
 0x3f1   : > { %v2871_v62 = vpop.f32.mrb[32].mxu0 }
 0x3f2   : > { %v2877_v21 = vadd.f32 %v2871_v62, %v2796_v60  ;;  %v3598_v26 = vpop.f32.mrb[33].mxu0 }
 0x3f3   : > { %v2874_v27 = vpop.f32.mrb[34].mxu0 }
 0x3f4   : > { %v2879_v28 = vadd.f32 %v2878_v58, %v2877_v21  ;;  %v3599_v29 = vpop.f32.mrb[35].mxu0 }
 0x3f6   : > { %v2880_v35 = vmax.f32 %v2879_v28, 0.0 }
 0x3f8   : > { %v2881_v2 = vpack.c.bf16 %v2880_v35, %v2880_v35 }
 0x3fa   : > { %3609 = vmatmul.mubr.msk.bf16.vlgmr.msra.gmra.mrb[36].mxu0 %vm2552_vm0, %v2881_v2 }
 0x4cd   : > { %v2952_v31 = vpop.f32.mrb[36].mxu0 }
 0x4ce   : > { %v2953_v15 = vadd.f32 %v2952_v31, %v2890_v9  ;;  %v3610_v63 = vpop.f32.mrb[37].mxu0 }
 0x4cf   : > { %v2955_v5 = vpop.f32.mrb[38].mxu0 }
 0x4d0   : > { %2958 = vst [vmem:[%s327_s29] sm:$0x1] %v2953_v15  ;;  %v3611_v37 = vpop.f32.mrb[39].mxu0 }
 0x4d1   : > { %3847 = shalt.err (!%p3844_p3)
}
 0x4d2   : > { %s3848_s27 = scalar_lea.hbm %s4613_s23, 16  ;;  %s3852_s29 = scalar_lea.hbm %s4664_s9, 32 }
 0x4d3   : > { %p3849_p4 = scmp.ne.s32.totalorder %s4613_s23, %s3848_s27  ;;  %p3853_p9 = scmp.lt.u32.totalorder %s4613_s23, %s4664_s9 }
 0x4d4   : > { %p3854_p10 = scmp.lt.u32.totalorder %s3852_s29, %s3848_s27  ;;  %p3856_p12 = scmp.lt.u32.totalorder %s3848_s27, %s4613_s23 }
 0x4d5   : > { %p3850_p7 = pnand %p3849_p4, %p3989_p5 }
 0x4d6   : > { %p3855_p11 = por %p3854_p10, %p3853_p9 }
 0x4d7   : > { %p3851_p8 = pneg %p3850_p7 }
 0x4d8   : > { %p3857_p13 = por %p3856_p12, %p3855_p11 }
 0x4da   : > { %p3858_p0 = pnand %p3857_p13, %p3851_p8 }
 0x4dc   : > { %3861 = shalt.err (!%p3858_p0)
}
 0x4dd   : > { %3707 = dma.vmem_to_hbm [thread:$0]  (%p3989_p5), %s4615_s14, 16, %s4613_s23, %s2960_s22  }
 0x4de PF: > { %p3713_p1 = scmp.ge.s32.totalorder %s3896_s12, 2  ;;  %s2984_s13 = sand.u32 1, %s3884_s30  }
 0x4df   : > { %s2985_s24 = scalar_lea.sflag [#allocation4], %s2984_s13 }
 0x4e0   : > { %p3710_p2 = pnand %p3713_p1, %p3993_p6 }
 0x4e2   : > { %3879 = dma.done.wait (!%p3710_p2), %s2985_s24, 16  }
 0x4e3   : > { %3881 = vsyncadd (!%p3710_p2), %s2985_s24, 4294967280  ;;  %p19_p3 = scmp.ge.s32.totalorder %s3976_s15, 4   ;;  %s4667_s30 = smov %s3888_s10 }
 0x4e4   : > { %s4668_s10 = smov %s3892_s11  ;;  %s4669_s11 = smov %s3987_s18 }
 0x4e5   : > { %s4670_s12 = smov %s3976_s15  ;;  %21 = sbr.rel (!%p19_p3) target bundleno = 3 (0x3), region = 94 }
 0x4ec   :  { %2989 = vsyncpa [#allocation4], 1 }
 0x4ed   :  { %2991 = vsyncpa [#allocation4 + $0x1], 1 }

</bundles_post_ra>
